<compile_context>
chip_gen: v7x
topology: tpu7x:2x2x1
jax: 0.10.0
libtpu: 0.0.40
codegen_flags: <defaults>
</compile_context>

<pallas_src>
import functools

import jax
import jax.numpy as jnp
from jax.experimental import pallas as pl
from jax.experimental.pallas import tpu as pltpu


_SMALL_C_MXU_CUTOFF = 32  # below this contraction size, skip the MXU


# ----------------------------- kernel helpers ------------------------------


def _row(b_ref):
    c = b_ref.shape[-1]
    return jnp.reshape(b_ref[...], (1, 1, c))


def _pointwise(y, w_ref):
    """1x1 conv == contraction over the channel axis.

    Tiny channel counts (the demo) use per-channel broadcast FMAs on the VPU —
    a (tb*h,4)x(4,8) matmul would waste the MXU and drag relayouts with it.
    Real channel counts use dot_general contracting the last axis (no 2-D
    reshape -> no VMEM relayout copy)."""
    ci = y.shape[-1]
    co = w_ref.shape[1]
    w = w_ref[...]
    if ci < _SMALL_C_MXU_CUTOFF:
        acc = y[:, :, 0:1] * jnp.reshape(w[0:1, :], (1, 1, co))
        for i in range(1, ci):
            acc = acc + y[:, :, i:i + 1] * jnp.reshape(w[i:i + 1, :], (1, 1, co))
        return acc
    return jax.lax.dot_general(
        y, w, (((2,), (0,)), ((), ())),
        preferred_element_type=jnp.float32,
        precision=jax.lax.Precision.HIGHEST)


def _dw_strided_ref(x_ref, w_ref, *, stride, pad, h_out, h_in):
    """Depthwise (k,1) conv along H, reading (possibly strided) taps directly
    from the input ref (no padded VMEM scratch).  Taps whose window crosses a
    boundary are realigned with a non-negative pltpu.roll (XLU slot) and
    masked.  The accumulator is initialised from the first unshifted tap."""
    k, c = w_ref.shape
    w = w_ref[...]
    row = jax.lax.broadcasted_iota(jnp.int32, (1, h_out, 1), 1)

    taps = []
    for t in range(k):
        off = t - pad                                # input row for output row 0
        n_lead = 0 if off >= 0 else (-off + stride - 1) // stride
        o_max = (h_in - 1 - off) // stride
        n_tail = max(0, (h_out - 1) - o_max)
        assert n_lead == 0 or n_tail == 0, "unsupported (k, stride, pad) combo"
        shift = n_lead - n_tail
        start = off + shift * stride
        assert 0 <= start and start + (h_out - 1) * stride <= h_in - 1
        taps.append((t, start, n_lead, n_tail, shift))

    # Unshifted taps first: the accumulator starts from a plain FMA instead of
    # a zero fill + add, and unmasked taps need no select.
    taps.sort(key=lambda it: (it[4] != 0, it[0]))

    acc = None
    for t, start, n_lead, n_tail, shift in taps:
        idx = pl.ds(start, h_out, stride) if stride > 1 else pl.ds(start, h_out)
        tap = x_ref[:, idx, :]
        if shift != 0:
            tap = pltpu.roll(tap, shift % h_out, axis=1)   # non-negative rotation
            valid = (row >= n_lead) & (row < h_out - n_tail)
            tap = jnp.where(valid, tap, 0.0)
        term = tap * jnp.reshape(w[t:t + 1, :], (1, 1, c))
        acc = term if acc is None else acc + term
    return acc


def _dw_stride1_value(y, w_ref, *, pad):
    """Stride-1 depthwise (k,1) conv along H on an in-register value using
    non-negative pltpu.roll for the taps (no scratch store / reload)."""
    tb, h, c = y.shape
    k = w_ref.shape[0]
    w = w_ref[...]
    h_o = h + 2 * pad - k + 1
    row = jax.lax.broadcasted_iota(jnp.int32, (1, h, 1), 1)

    # Center (unshifted) tap first so the accumulator needs no zero fill.
    order = sorted(range(k), key=lambda t: (t != pad, t))
    acc = None
    for t in order:
        off = t - pad
        if off == 0:
            tap = y
        else:
            tap = pltpu.roll(y, (-off) % h, axis=1)        # non-negative rotation
            valid = (row >= -off) & (row < h - off)
            tap = jnp.where(valid, tap, 0.0)
        term = tap * jnp.reshape(w[t:t + 1, :], (1, 1, c))
        acc = term if acc is None else acc + term
    return acc if h_o == h else acc[:, :h_o, :]


# --------------------------------- kernel ----------------------------------


def _block_kernel(*refs, k, stride, pad, h_in, h_out, has_proj):
    if has_proj:
        (x_ref, dw1_ref, b1_ref, pw1_ref, b2_ref,
         dw2_ref, b3_ref, pw2_ref, b4_ref, sc_ref, bs_ref, o_ref) = refs
    else:
        (x_ref, dw1_ref, b1_ref, pw1_ref, b2_ref,
         dw2_ref, b3_ref, pw2_ref, b4_ref, o_ref) = refs
        sc_ref = bs_ref = None

    # --- main branch (BN scales already folded into the conv weights) ---
    y = _dw_strided_ref(x_ref, dw1_ref, stride=stride, pad=pad,
                        h_out=h_out, h_in=h_in)
    y = jnp.maximum(y + _row(b1_ref), 0.0)
    y = _pointwise(y, pw1_ref)
    y = jnp.maximum(y + _row(b2_ref), 0.0)
    y = _dw_stride1_value(y, dw2_ref, pad=pad)
    y = jnp.maximum(y + _row(b3_ref), 0.0)
    y = _pointwise(y, pw2_ref)
    y = y + _row(b4_ref)

    # --- shortcut branch ---
    if has_proj:
        idx = pl.ds(0, h_out, stride) if stride > 1 else pl.ds(0, h_out)
        xs = x_ref[:, idx, :]
        s = _pointwise(xs, sc_ref) + _row(bs_ref)
    else:  # identity shortcut specialised away statically
        s = x_ref[...]

    o_ref[...] = jnp.maximum(y + s, 0.0)


# ---------------------- VMEM budgets & block-size pick -----------------------


def _round_up(x, m):
    return ((x + m - 1) // m) * m


def _vmem_capacity_bytes():
    try:
        cap = getattr(pltpu.get_tpu_info(), "vmem_capacity_bytes", None)
        if cap:
            return int(cap)
    except Exception:
        pass
    return 64 << 20   # conservative fallback: v7x has the smallest VMEM per TC


def _vmem_limit_bytes(cap):
    # ~48 MiB on v7x (64 MiB physical), capped at 96 MiB on 128 MiB parts.
    return int(min(cap * 3 // 4, 96 << 20))


def _tile_budget_bytes(cap):
    # ~19 MiB per tile working set on v7x, ~38 MiB on v5e/v6e.
    return int(min(cap * 3 // 10, 48 << 20))


def _pick_block_b(b, h, c_in, h_out, c_out, *, k, has_proj, budget_bytes):
    """Choose the B-rows per tile from (8,128)-padded VMEM accounting."""
    def tile_bytes(rows, cols):
        return _round_up(max(rows, 1), 8) * _round_up(max(cols, 1), 128) * 4

    in_row = tile_bytes(h, c_in)
    out_row = tile_bytes(h_out, c_out)
    # live in-kernel intermediates per B-row (post-pw1 y, dw accumulator, tap
    # temporaries, shortcut): ~4 output-sized f32 tiles is a safe bound.
    inter_row = 4 * tile_bytes(h, c_out)
    per_row = 2 * in_row + 2 * out_row + inter_row       # x2 = double buffering

    w_bytes = 2 * (tile_bytes(k, c_in) + tile_bytes(k, c_out)
                   + tile_bytes(c_in, c_out) + tile_bytes(c_out, c_out)
                   + tile_bytes(1, c_in) + 3 * tile_bytes(1, c_out))
    if has_proj:
        w_bytes += 2 * (tile_bytes(c_in, c_out) + tile_bytes(1, c_out))

    avail = max(budget_bytes - w_bytes, per_row)
    tb = max(1, min(b, avail // per_row))
    # Keep >= ~8 grid steps when B allows it: balances the 2 TCs on v7x and
    # keeps the input/output pipeline overlapped.
    tb = min(tb, max(1, -(-b // 8)))
    if tb > 8:
        tb = (tb // 8) * 8
    return int(tb)


# -------------------------------- wrappers -----------------------------------


def depthwise_block_forward_bhc(x_bhc, raw_params, *, k, stride, block_b=None,
                                eps=1e-5):
    """Fused DepthwiseBlock on activations already in (B, H, C) layout."""
    b, h, c_in = x_bhc.shape
    pad = (k - 1) // 2
    h_out = (h + 2 * pad - k) // stride + 1
    assert h_out == (h - 1) // stride + 1, "seq/shortcut output heights differ"

    fp = fold_params(raw_params, eps=eps)
    has_proj = "sc_w" in fp
    c_out = fp["pw1_w"].shape[1]

    cap = _vmem_capacity_bytes()
    if block_b is None:
        block_b = _pick_block_b(b, h, c_in, h_out, c_out, k=k,
                                has_proj=has_proj,
                                budget_bytes=_tile_budget_bytes(cap))
    block_b = int(min(block_b, b))

    # Non-divisible B: zero-pad B up to a multiple of the block (masked tail)
    # instead of shrinking block_b towards 1.
    b_pad = _round_up(b, block_b)
    x = x_bhc if b_pad == b else jnp.pad(x_bhc, ((0, b_pad - b), (0, 0), (0, 0)))
    grid = (b_pad // block_b,)

    kernel = functools.partial(_block_kernel, k=k, stride=stride, pad=pad,
                               h_in=h, h_out=h_out, has_proj=has_proj)

    def full2d(a):  # small weight / shift arrays: whole array, VMEM-resident
        return pl.BlockSpec(a.shape, lambda i: (0, 0))

    args = [x, fp["dw1_w"], fp["b1"], fp["pw1_w"], fp["b2"],
            fp["dw2_w"], fp["b3"], fp["pw2_w"], fp["b4"]]
    in_specs = ([pl.BlockSpec((block_b, h, c_in), lambda i: (i, 0, 0))]
                + [full2d(a) for a in args[1:]])
    if has_proj:
        args += [fp["sc_w"], fp["bs"]]
        in_specs += [full2d(fp["sc_w"]), full2d(fp["bs"])]

    out = pl.pallas_call(
        kernel,
        grid=grid,
        in_specs=in_specs,
        out_specs=pl.BlockSpec((block_b, h_out, c_out), lambda i: (i, 0, 0)),
        out_shape=jax.ShapeDtypeStruct((b_pad, h_out, c_out), jnp.float32),
        compiler_params=pltpu.CompilerParams(
            dimension_semantics=("parallel",),
            vmem_limit_bytes=_vmem_limit_bytes(cap)),
    )(*args)

    return out if b_pad == b else out[:b]


def depthwise_block_forward(x_nchw, raw_params, *, k, stride, block_b=None,
                            eps=1e-5):
    """NCHW adapter for parity with the PyTorch module.  When stacking blocks,
    keep activations in (B, H, C) and call depthwise_block_forward_bhc
    directly to avoid two full-tensor HBM transposes per block."""
    n, c_in, h, w = x_nchw.shape
    x = jnp.transpose(x_nchw, (0, 3, 2, 1)).reshape(n * w, h, c_in)  # (B,H,C)
    out = depthwise_block_forward_bhc(x, raw_params, k=k, stride=stride,
                                      block_b=block_b, eps=eps)
    h_out, c_out = out.shape[1], out.shape[2]
    return jnp.transpose(out.reshape(n, w, h_out, c_out), (0, 3, 2, 1))


# -------------------- parameter construction & BN folding -------------------


def make_params(key, c_in, c_out, k, stride):
    keys = iter(jax.random.split(key, 40))

    def nrm(shape, scale=0.2):
        return scale * jax.random.normal(next(keys), shape, jnp.float32)

    def bn(c):
        gamma = 1.0 + 0.1 * jax.random.normal(next(keys), (c,), jnp.float32)
        beta = 0.1 * jax.random.normal(next(keys), (c,), jnp.float32)
        mean = 0.1 * jax.random.normal(next(keys), (c,), jnp.float32)
        var = 0.5 + jax.random.uniform(next(keys), (c,), jnp.float32)
        return (gamma, beta, mean, var)

    p = {
        "dw1_w": nrm((k, c_in)), "dw1_b": nrm((c_in,), 0.1), "bn1": bn(c_in),
        "pw1_w": nrm((c_in, c_out)), "pw1_b": nrm((c_out,), 0.1), "bn2": bn(c_out),
        "dw2_w": nrm((k, c_out)), "dw2_b": nrm((c_out,), 0.1), "bn3": bn(c_out),
        "pw2_w": nrm((c_out, c_out)), "pw2_b": nrm((c_out,), 0.1), "bn4": bn(c_out),
    }
    if not (c_in == c_out and stride == 1):
        p["sc_w"] = nrm((c_in, c_out))
        p["sc_b"] = nrm((c_out,), 0.1)
        p["bns"] = bn(c_out)
    return p


def fold_params(p, eps=1e-5):
    """Fold inference-mode BN (and the conv bias) into the conv weights; keep
    only a per-channel shift for the kernel."""
    def scale_shift(bn):
        g, be, m, v = bn
        s = g / jnp.sqrt(v + eps)
        return s, be - s * m

    f = {}
    s, t = scale_shift(p["bn1"])
    f["dw1_w"] = p["dw1_w"] * s[None, :]
    f["b1"] = (t + s * p["dw1_b"]).reshape(1, -1)
    s, t = scale_shift(p["bn2"])
    f["pw1_w"] = p["pw1_w"] * s[None, :]
    f["b2"] = (t + s * p["pw1_b"]).reshape(1, -1)
    s, t = scale_shift(p["bn3"])
    f["dw2_w"] = p["dw2_w"] * s[None, :]
    f["b3"] = (t + s * p["dw2_b"]).reshape(1, -1)
    s, t = scale_shift(p["bn4"])
    f["pw2_w"] = p["pw2_w"] * s[None, :]
    f["b4"] = (t + s * p["pw2_b"]).reshape(1, -1)
    if "sc_w" in p:
        s, t = scale_shift(p["bns"])
        f["sc_w"] = p["sc_w"] * s[None, :]
        f["bs"] = (t + s * p["sc_b"]).reshape(1, -1)
    return f


# ---------------------------- pure-JAX reference ----------------------------


def reference_forward(x, p, *, k, stride, eps=1e-5):
    pad = (k - 1) // 2
    hp = jax.lax.Precision.HIGHEST

    def dw(y, w, b_, s):
        h_ = y.shape[1]
        h_o = (h_ + 2 * pad - k) // s + 1
        yp = jnp.pad(y, ((0, 0), (pad, pad), (0, 0)))
        acc = jnp.zeros((y.shape[0], h_o, y.shape[2]), jnp.float32)
        for t in range(k):
            acc = acc + yp[:, t:t + s * h_o:s, :] * w[t][None, None, :]
        return acc + b_[None, None, :]

    def pw(y, w, b_):
        return jnp.einsum("bhc,cd->bhd", y, w, precision=hp) + b_[None, None, :]

    def bn(y, prm):
        g, be, m, v = prm
        s_ = g / jnp.sqrt(v + eps)
        return (y - m[None, None, :]) * s_[None, None, :] + be[None, None, :]

    relu = lambda z: jnp.maximum(z, 0.0)

    y = relu(bn(dw(x, p["dw1_w"], p["dw1_b"], stride), p["bn1"]))
    y = relu(bn(pw(y, p["pw1_w"], p["pw1_b"]), p["bn2"]))
    y = relu(bn(dw(y, p["dw2_w"], p["dw2_b"], 1), p["bn3"]))
    y = bn(pw(y, p["pw2_w"], p["pw2_b"]), p["bn4"])
    h_o = y.shape[1]
    if "sc_w" in p:
        xs = x[:, 0:stride * h_o:stride, :]
        s = bn(pw(xs, p["sc_w"], p["sc_b"]), p["bns"])
    else:
        s = x
    return relu(y + s)


# ----------------------------------- main -----------------------------------


if __name__ == "__main__":
    N, C_IN, C_OUT, H, W = 2, 4, 8, 16, 16
    K, STRIDE = 3, 2

    key = jax.random.PRNGKey(0)
    kx, kp = jax.random.split(key)
    x_nchw = jax.random.normal(kx, (N, C_IN, H, W), jnp.float32)
    params = make_params(kp, C_IN, C_OUT, K, STRIDE)

    # block_b=8 -> grid=(4,): exercises the double-buffered pipeline even at
    # demo scale (production sizes let _pick_block_b choose from real VMEM
    # budgets).
    out = depthwise_block_forward(x_nchw, params, k=K, stride=STRIDE, block_b=8)
    out = jax.block_until_ready(out)

    h_out = (H - 1) // STRIDE + 1
    assert out.shape == (N, C_OUT, h_out, W), out.shape
    assert bool(jnp.all(jnp.isfinite(out)))

    x_bhc = jnp.transpose(x_nchw, (0, 3, 2, 1)).reshape(N * W, H, C_IN)
    ref = reference_forward(x_bhc, params, k=K, stride=STRIDE)
    ref_nchw = jnp.transpose(ref.reshape(N, W, h_out, C_OUT), (0, 3, 2, 1))
    max_err = float(jnp.max(jnp.abs(out - ref_nchw)))
    assert bool(jnp.allclose(out, ref_nchw, rtol=2e-2, atol=2e-2)), max_err

    print("KERNEL_OK")
</pallas_src>

<mosaic_0001>
module attributes {stable_mosaic.version = 11 : i64} {
  func.func @_block_kernel(%arg0: i32, %arg1: memref<8x16x4xf32, #tpu.memory_space<vmem>>, %arg2: memref<3x4xf32, #tpu.memory_space<vmem>>, %arg3: memref<1x4xf32, #tpu.memory_space<vmem>>, %arg4: memref<4x8xf32, #tpu.memory_space<vmem>>, %arg5: memref<1x8xf32, #tpu.memory_space<vmem>>, %arg6: memref<3x8xf32, #tpu.memory_space<vmem>>, %arg7: memref<1x8xf32, #tpu.memory_space<vmem>>, %arg8: memref<8x8xf32, #tpu.memory_space<vmem>>, %arg9: memref<1x8xf32, #tpu.memory_space<vmem>>, %arg10: memref<4x8xf32, #tpu.memory_space<vmem>>, %arg11: memref<1x8xf32, #tpu.memory_space<vmem>>, %arg12: memref<8x8x8xf32, #tpu.memory_space<vmem>>) attributes {dimension_semantics = [#tpu.dimension_semantics<parallel>], iteration_bounds = array<i64: 4>, scalar_prefetch = 0 : i64, scratch_operands = 0 : i64, tpu.core_type = #tpu.core_type<tc>, window_params = [{transform_indices = @transform_0, window_bounds = array<i64: 8, 16, 4>}, {pipeline_mode = #tpu.pipeline_mode<synchronous>, transform_indices = @transform_1, window_bounds = array<i64: 3, 4>}, {pipeline_mode = #tpu.pipeline_mode<synchronous>, transform_indices = @transform_2, window_bounds = array<i64: 1, 4>}, {pipeline_mode = #tpu.pipeline_mode<synchronous>, transform_indices = @transform_3, window_bounds = array<i64: 4, 8>}, {pipeline_mode = #tpu.pipeline_mode<synchronous>, transform_indices = @transform_4, window_bounds = array<i64: 1, 8>}, {pipeline_mode = #tpu.pipeline_mode<synchronous>, transform_indices = @transform_5, window_bounds = array<i64: 3, 8>}, {pipeline_mode = #tpu.pipeline_mode<synchronous>, transform_indices = @transform_6, window_bounds = array<i64: 1, 8>}, {pipeline_mode = #tpu.pipeline_mode<synchronous>, transform_indices = @transform_7, window_bounds = array<i64: 8, 8>}, {pipeline_mode = #tpu.pipeline_mode<synchronous>, transform_indices = @transform_8, window_bounds = array<i64: 1, 8>}, {pipeline_mode = #tpu.pipeline_mode<synchronous>, transform_indices = @transform_9, window_bounds = array<i64: 4, 8>}, {pipeline_mode = #tpu.pipeline_mode<synchronous>, transform_indices = @transform_10, window_bounds = array<i64: 1, 8>}, {transform_indices = @transform_11, window_bounds = array<i64: 8, 8, 8>}]} {
    %c0 = arith.constant 0 : index
    %c0_0 = arith.constant 0 : index
    %0 = vector.load %arg2[%c0, %c0_0] : memref<3x4xf32, #tpu.memory_space<vmem>>, vector<3x4xf32>
    %1 = tpu.iota {dimensions = array<i32: 1>} : vector<1x8x1xi32>
    %c0_1 = arith.constant 0 : index
    %c0_2 = arith.constant 0 : index
    %c0_3 = arith.constant 0 : index
    %2 = tpu.strided_load %arg1[%c0_1, %c0_2, %c0_3] {strides = array<i32: 1, 2, 1>} : memref<8x16x4xf32, #tpu.memory_space<vmem>>, vector<8x8x4xf32>
    %3 = vector.extract_strided_slice %0 {offsets = [1, 0], sizes = [1, 4], strides = [1, 1]} : vector<3x4xf32> to vector<1x4xf32>
    %4 = vector.shape_cast %3 : vector<1x4xf32> to vector<1x1x4xf32>
    %5 = vector.broadcast %4 : vector<1x1x4xf32> to vector<8x8x4xf32>
    %6 = arith.mulf %2, %5 : vector<8x8x4xf32>
    %c0_4 = arith.constant 0 : index
    %c1 = arith.constant 1 : index
    %c0_5 = arith.constant 0 : index
    %7 = tpu.strided_load %arg1[%c0_4, %c1, %c0_5] {strides = array<i32: 1, 2, 1>} : memref<8x16x4xf32, #tpu.memory_space<vmem>>, vector<8x8x4xf32>
    %8 = vector.extract_strided_slice %0 {offsets = [2, 0], sizes = [1, 4], strides = [1, 1]} : vector<3x4xf32> to vector<1x4xf32>
    %9 = vector.shape_cast %8 : vector<1x4xf32> to vector<1x1x4xf32>
    %10 = vector.broadcast %9 : vector<1x1x4xf32> to vector<8x8x4xf32>
    %11 = arith.mulf %7, %10 : vector<8x8x4xf32>
    %12 = arith.addf %6, %11 : vector<8x8x4xf32>
    %c0_6 = arith.constant 0 : index
    %c1_7 = arith.constant 1 : index
    %c0_8 = arith.constant 0 : index
    %13 = tpu.strided_load %arg1[%c0_6, %c1_7, %c0_8] {strides = array<i32: 1, 2, 1>} : memref<8x16x4xf32, #tpu.memory_space<vmem>>, vector<8x8x4xf32>
    %c1_i32 = arith.constant 1 : i32
    %14 = tpu.dynamic_rotate %13 by %c1_i32 dim 1 : vector<8x8x4xf32>, i32 -> vector<8x8x4xf32>
    %c1_i32_9 = arith.constant 1 : i32
    %15 = vector.broadcast %c1_i32_9 : i32 to vector<1x8x1xi32>
    %16 = arith.cmpi sge, %1, %15 : vector<1x8x1xi32>
    %c8_i32 = arith.constant 8 : i32
    %17 = vector.broadcast %c8_i32 : i32 to vector<1x8x1xi32>
    %18 = arith.cmpi slt, %1, %17 : vector<1x8x1xi32>
    %19 = arith.andi %16, %18 : vector<1x8x1xi1>
    %cst = arith.constant 0.000000e+00 : f32
    %20 = vector.shape_cast %19 : vector<1x8x1xi1> to vector<1x8x1xi1>
    %21 = vector.broadcast %20 : vector<1x8x1xi1> to vector<8x8x4xi1>
    %22 = vector.broadcast %cst : f32 to vector<8x8x4xf32>
    %23 = arith.select %21, %14, %22 : vector<8x8x4xi1>, vector<8x8x4xf32>
    %24 = vector.extract_strided_slice %0 {offsets = [0, 0], sizes = [1, 4], strides = [1, 1]} : vector<3x4xf32> to vector<1x4xf32>
    %25 = vector.shape_cast %24 : vector<1x4xf32> to vector<1x1x4xf32>
    %26 = vector.broadcast %25 : vector<1x1x4xf32> to vector<8x8x4xf32>
    %27 = arith.mulf %23, %26 : vector<8x8x4xf32>
    %28 = arith.addf %12, %27 : vector<8x8x4xf32>
    %c0_10 = arith.constant 0 : index
    %c0_11 = arith.constant 0 : index
    %29 = vector.load %arg3[%c0_10, %c0_11] : memref<1x4xf32, #tpu.memory_space<vmem>>, vector<1x4xf32>
    %30 = vector.shape_cast %29 : vector<1x4xf32> to vector<1x1x4xf32>
    %31 = vector.broadcast %30 : vector<1x1x4xf32> to vector<8x8x4xf32>
    %32 = arith.addf %28, %31 : vector<8x8x4xf32>
    %cst_12 = arith.constant 0.000000e+00 : f32
    %33 = vector.broadcast %cst_12 : f32 to vector<8x8x4xf32>
    %34 = arith.maximumf %32, %33 : vector<8x8x4xf32>
    %c0_13 = arith.constant 0 : index
    %c0_14 = arith.constant 0 : index
    %35 = vector.load %arg4[%c0_13, %c0_14] : memref<4x8xf32, #tpu.memory_space<vmem>>, vector<4x8xf32>
    %36 = vector.extract_strided_slice %34 {offsets = [0, 0, 0], sizes = [8, 8, 1], strides = [1, 1, 1]} : vector<8x8x4xf32> to vector<8x8x1xf32>
    %37 = vector.extract_strided_slice %35 {offsets = [0, 0], sizes = [1, 8], strides = [1, 1]} : vector<4x8xf32> to vector<1x8xf32>
    %38 = vector.shape_cast %37 : vector<1x8xf32> to vector<1x1x8xf32>
    %39 = vector.broadcast %36 : vector<8x8x1xf32> to vector<8x8x8xf32>
    %40 = vector.broadcast %38 : vector<1x1x8xf32> to vector<8x8x8xf32>
    %41 = arith.mulf %39, %40 : vector<8x8x8xf32>
    %42 = vector.extract_strided_slice %34 {offsets = [0, 0, 1], sizes = [8, 8, 1], strides = [1, 1, 1]} : vector<8x8x4xf32> to vector<8x8x1xf32>
    %43 = vector.extract_strided_slice %35 {offsets = [1, 0], sizes = [1, 8], strides = [1, 1]} : vector<4x8xf32> to vector<1x8xf32>
    %44 = vector.shape_cast %43 : vector<1x8xf32> to vector<1x1x8xf32>
    %45 = vector.broadcast %42 : vector<8x8x1xf32> to vector<8x8x8xf32>
    %46 = vector.broadcast %44 : vector<1x1x8xf32> to vector<8x8x8xf32>
    %47 = arith.mulf %45, %46 : vector<8x8x8xf32>
    %48 = arith.addf %41, %47 : vector<8x8x8xf32>
    %49 = vector.extract_strided_slice %34 {offsets = [0, 0, 2], sizes = [8, 8, 1], strides = [1, 1, 1]} : vector<8x8x4xf32> to vector<8x8x1xf32>
    %50 = vector.extract_strided_slice %35 {offsets = [2, 0], sizes = [1, 8], strides = [1, 1]} : vector<4x8xf32> to vector<1x8xf32>
    %51 = vector.shape_cast %50 : vector<1x8xf32> to vector<1x1x8xf32>
    %52 = vector.broadcast %49 : vector<8x8x1xf32> to vector<8x8x8xf32>
    %53 = vector.broadcast %51 : vector<1x1x8xf32> to vector<8x8x8xf32>
    %54 = arith.mulf %52, %53 : vector<8x8x8xf32>
    %55 = arith.addf %48, %54 : vector<8x8x8xf32>
    %56 = vector.extract_strided_slice %34 {offsets = [0, 0, 3], sizes = [8, 8, 1], strides = [1, 1, 1]} : vector<8x8x4xf32> to vector<8x8x1xf32>
    %57 = vector.extract_strided_slice %35 {offsets = [3, 0], sizes = [1, 8], strides = [1, 1]} : vector<4x8xf32> to vector<1x8xf32>
    %58 = vector.shape_cast %57 : vector<1x8xf32> to vector<1x1x8xf32>
    %59 = vector.broadcast %56 : vector<8x8x1xf32> to vector<8x8x8xf32>
    %60 = vector.broadcast %58 : vector<1x1x8xf32> to vector<8x8x8xf32>
    %61 = arith.mulf %59, %60 : vector<8x8x8xf32>
    %62 = arith.addf %55, %61 : vector<8x8x8xf32>
    %c0_15 = arith.constant 0 : index
    %c0_16 = arith.constant 0 : index
    %63 = vector.load %arg5[%c0_15, %c0_16] : memref<1x8xf32, #tpu.memory_space<vmem>>, vector<1x8xf32>
    %64 = vector.shape_cast %63 : vector<1x8xf32> to vector<1x1x8xf32>
    %65 = vector.broadcast %64 : vector<1x1x8xf32> to vector<8x8x8xf32>
    %66 = arith.addf %62, %65 : vector<8x8x8xf32>
    %cst_17 = arith.constant 0.000000e+00 : f32
    %67 = vector.broadcast %cst_17 : f32 to vector<8x8x8xf32>
    %68 = arith.maximumf %66, %67 : vector<8x8x8xf32>
    %c0_18 = arith.constant 0 : index
    %c0_19 = arith.constant 0 : index
    %69 = vector.load %arg6[%c0_18, %c0_19] : memref<3x8xf32, #tpu.memory_space<vmem>>, vector<3x8xf32>
    %70 = tpu.iota {dimensions = array<i32: 1>} : vector<1x8x1xi32>
    %71 = vector.extract_strided_slice %69 {offsets = [1, 0], sizes = [1, 8], strides = [1, 1]} : vector<3x8xf32> to vector<1x8xf32>
    %72 = vector.shape_cast %71 : vector<1x8xf32> to vector<1x1x8xf32>
    %73 = vector.broadcast %72 : vector<1x1x8xf32> to vector<8x8x8xf32>
    %74 = arith.mulf %68, %73 : vector<8x8x8xf32>
    %c1_i32_20 = arith.constant 1 : i32
    %75 = tpu.dynamic_rotate %68 by %c1_i32_20 dim 1 : vector<8x8x8xf32>, i32 -> vector<8x8x8xf32>
    %c1_i32_21 = arith.constant 1 : i32
    %76 = vector.broadcast %c1_i32_21 : i32 to vector<1x8x1xi32>
    %77 = arith.cmpi sge, %70, %76 : vector<1x8x1xi32>
    %c9_i32 = arith.constant 9 : i32
    %78 = vector.broadcast %c9_i32 : i32 to vector<1x8x1xi32>
    %79 = arith.cmpi slt, %70, %78 : vector<1x8x1xi32>
    %80 = arith.andi %77, %79 : vector<1x8x1xi1>
    %cst_22 = arith.constant 0.000000e+00 : f32
    %81 = vector.shape_cast %80 : vector<1x8x1xi1> to vector<1x8x1xi1>
    %82 = vector.broadcast %81 : vector<1x8x1xi1> to vector<8x8x8xi1>
    %83 = vector.broadcast %cst_22 : f32 to vector<8x8x8xf32>
    %84 = arith.select %82, %75, %83 : vector<8x8x8xi1>, vector<8x8x8xf32>
    %85 = vector.extract_strided_slice %69 {offsets = [0, 0], sizes = [1, 8], strides = [1, 1]} : vector<3x8xf32> to vector<1x8xf32>
    %86 = vector.shape_cast %85 : vector<1x8xf32> to vector<1x1x8xf32>
    %87 = vector.broadcast %86 : vector<1x1x8xf32> to vector<8x8x8xf32>
    %88 = arith.mulf %84, %87 : vector<8x8x8xf32>
    %89 = arith.addf %74, %88 : vector<8x8x8xf32>
    %c7_i32 = arith.constant 7 : i32
    %90 = tpu.dynamic_rotate %68 by %c7_i32 dim 1 : vector<8x8x8xf32>, i32 -> vector<8x8x8xf32>
    %c-1_i32 = arith.constant -1 : i32
    %91 = vector.broadcast %c-1_i32 : i32 to vector<1x8x1xi32>
    %92 = arith.cmpi sge, %70, %91 : vector<1x8x1xi32>
    %c7_i32_23 = arith.constant 7 : i32
    %93 = vector.broadcast %c7_i32_23 : i32 to vector<1x8x1xi32>
    %94 = arith.cmpi slt, %70, %93 : vector<1x8x1xi32>
    %95 = arith.andi %92, %94 : vector<1x8x1xi1>
    %cst_24 = arith.constant 0.000000e+00 : f32
    %96 = vector.shape_cast %95 : vector<1x8x1xi1> to vector<1x8x1xi1>
    %97 = vector.broadcast %96 : vector<1x8x1xi1> to vector<8x8x8xi1>
    %98 = vector.broadcast %cst_24 : f32 to vector<8x8x8xf32>
    %99 = arith.select %97, %90, %98 : vector<8x8x8xi1>, vector<8x8x8xf32>
    %100 = vector.extract_strided_slice %69 {offsets = [2, 0], sizes = [1, 8], strides = [1, 1]} : vector<3x8xf32> to vector<1x8xf32>
    %101 = vector.shape_cast %100 : vector<1x8xf32> to vector<1x1x8xf32>
    %102 = vector.broadcast %101 : vector<1x1x8xf32> to vector<8x8x8xf32>
    %103 = arith.mulf %99, %102 : vector<8x8x8xf32>
    %104 = arith.addf %89, %103 : vector<8x8x8xf32>
    %c0_25 = arith.constant 0 : index
    %c0_26 = arith.constant 0 : index
    %105 = vector.load %arg7[%c0_25, %c0_26] : memref<1x8xf32, #tpu.memory_space<vmem>>, vector<1x8xf32>
    %106 = vector.shape_cast %105 : vector<1x8xf32> to vector<1x1x8xf32>
    %107 = vector.broadcast %106 : vector<1x1x8xf32> to vector<8x8x8xf32>
    %108 = arith.addf %104, %107 : vector<8x8x8xf32>
    %cst_27 = arith.constant 0.000000e+00 : f32
    %109 = vector.broadcast %cst_27 : f32 to vector<8x8x8xf32>
    %110 = arith.maximumf %108, %109 : vector<8x8x8xf32>
    %c0_28 = arith.constant 0 : index
    %c0_29 = arith.constant 0 : index
    %111 = vector.load %arg8[%c0_28, %c0_29] : memref<8x8xf32, #tpu.memory_space<vmem>>, vector<8x8xf32>
    %112 = vector.extract_strided_slice %110 {offsets = [0, 0, 0], sizes = [8, 8, 1], strides = [1, 1, 1]} : vector<8x8x8xf32> to vector<8x8x1xf32>
    %113 = vector.extract_strided_slice %111 {offsets = [0, 0], sizes = [1, 8], strides = [1, 1]} : vector<8x8xf32> to vector<1x8xf32>
    %114 = vector.shape_cast %113 : vector<1x8xf32> to vector<1x1x8xf32>
    %115 = vector.broadcast %112 : vector<8x8x1xf32> to vector<8x8x8xf32>
    %116 = vector.broadcast %114 : vector<1x1x8xf32> to vector<8x8x8xf32>
    %117 = arith.mulf %115, %116 : vector<8x8x8xf32>
    %118 = vector.extract_strided_slice %110 {offsets = [0, 0, 1], sizes = [8, 8, 1], strides = [1, 1, 1]} : vector<8x8x8xf32> to vector<8x8x1xf32>
    %119 = vector.extract_strided_slice %111 {offsets = [1, 0], sizes = [1, 8], strides = [1, 1]} : vector<8x8xf32> to vector<1x8xf32>
    %120 = vector.shape_cast %119 : vector<1x8xf32> to vector<1x1x8xf32>
    %121 = vector.broadcast %118 : vector<8x8x1xf32> to vector<8x8x8xf32>
    %122 = vector.broadcast %120 : vector<1x1x8xf32> to vector<8x8x8xf32>
    %123 = arith.mulf %121, %122 : vector<8x8x8xf32>
    %124 = arith.addf %117, %123 : vector<8x8x8xf32>
    %125 = vector.extract_strided_slice %110 {offsets = [0, 0, 2], sizes = [8, 8, 1], strides = [1, 1, 1]} : vector<8x8x8xf32> to vector<8x8x1xf32>
    %126 = vector.extract_strided_slice %111 {offsets = [2, 0], sizes = [1, 8], strides = [1, 1]} : vector<8x8xf32> to vector<1x8xf32>
    %127 = vector.shape_cast %126 : vector<1x8xf32> to vector<1x1x8xf32>
    %128 = vector.broadcast %125 : vector<8x8x1xf32> to vector<8x8x8xf32>
    %129 = vector.broadcast %127 : vector<1x1x8xf32> to vector<8x8x8xf32>
    %130 = arith.mulf %128, %129 : vector<8x8x8xf32>
    %131 = arith.addf %124, %130 : vector<8x8x8xf32>
    %132 = vector.extract_strided_slice %110 {offsets = [0, 0, 3], sizes = [8, 8, 1], strides = [1, 1, 1]} : vector<8x8x8xf32> to vector<8x8x1xf32>
    %133 = vector.extract_strided_slice %111 {offsets = [3, 0], sizes = [1, 8], strides = [1, 1]} : vector<8x8xf32> to vector<1x8xf32>
    %134 = vector.shape_cast %133 : vector<1x8xf32> to vector<1x1x8xf32>
    %135 = vector.broadcast %132 : vector<8x8x1xf32> to vector<8x8x8xf32>
    %136 = vector.broadcast %134 : vector<1x1x8xf32> to vector<8x8x8xf32>
    %137 = arith.mulf %135, %136 : vector<8x8x8xf32>
    %138 = arith.addf %131, %137 : vector<8x8x8xf32>
    %139 = vector.extract_strided_slice %110 {offsets = [0, 0, 4], sizes = [8, 8, 1], strides = [1, 1, 1]} : vector<8x8x8xf32> to vector<8x8x1xf32>
    %140 = vector.extract_strided_slice %111 {offsets = [4, 0], sizes = [1, 8], strides = [1, 1]} : vector<8x8xf32> to vector<1x8xf32>
    %141 = vector.shape_cast %140 : vector<1x8xf32> to vector<1x1x8xf32>
    %142 = vector.broadcast %139 : vector<8x8x1xf32> to vector<8x8x8xf32>
    %143 = vector.broadcast %141 : vector<1x1x8xf32> to vector<8x8x8xf32>
    %144 = arith.mulf %142, %143 : vector<8x8x8xf32>
    %145 = arith.addf %138, %144 : vector<8x8x8xf32>
    %146 = vector.extract_strided_slice %110 {offsets = [0, 0, 5], sizes = [8, 8, 1], strides = [1, 1, 1]} : vector<8x8x8xf32> to vector<8x8x1xf32>
    %147 = vector.extract_strided_slice %111 {offsets = [5, 0], sizes = [1, 8], strides = [1, 1]} : vector<8x8xf32> to vector<1x8xf32>
    %148 = vector.shape_cast %147 : vector<1x8xf32> to vector<1x1x8xf32>
    %149 = vector.broadcast %146 : vector<8x8x1xf32> to vector<8x8x8xf32>
    %150 = vector.broadcast %148 : vector<1x1x8xf32> to vector<8x8x8xf32>
    %151 = arith.mulf %149, %150 : vector<8x8x8xf32>
    %152 = arith.addf %145, %151 : vector<8x8x8xf32>
    %153 = vector.extract_strided_slice %110 {offsets = [0, 0, 6], sizes = [8, 8, 1], strides = [1, 1, 1]} : vector<8x8x8xf32> to vector<8x8x1xf32>
    %154 = vector.extract_strided_slice %111 {offsets = [6, 0], sizes = [1, 8], strides = [1, 1]} : vector<8x8xf32> to vector<1x8xf32>
    %155 = vector.shape_cast %154 : vector<1x8xf32> to vector<1x1x8xf32>
    %156 = vector.broadcast %153 : vector<8x8x1xf32> to vector<8x8x8xf32>
    %157 = vector.broadcast %155 : vector<1x1x8xf32> to vector<8x8x8xf32>
    %158 = arith.mulf %156, %157 : vector<8x8x8xf32>
    %159 = arith.addf %152, %158 : vector<8x8x8xf32>
    %160 = vector.extract_strided_slice %110 {offsets = [0, 0, 7], sizes = [8, 8, 1], strides = [1, 1, 1]} : vector<8x8x8xf32> to vector<8x8x1xf32>
    %161 = vector.extract_strided_slice %111 {offsets = [7, 0], sizes = [1, 8], strides = [1, 1]} : vector<8x8xf32> to vector<1x8xf32>
    %162 = vector.shape_cast %161 : vector<1x8xf32> to vector<1x1x8xf32>
    %163 = vector.broadcast %160 : vector<8x8x1xf32> to vector<8x8x8xf32>
    %164 = vector.broadcast %162 : vector<1x1x8xf32> to vector<8x8x8xf32>
    %165 = arith.mulf %163, %164 : vector<8x8x8xf32>
    %166 = arith.addf %159, %165 : vector<8x8x8xf32>
    %c0_30 = arith.constant 0 : index
    %c0_31 = arith.constant 0 : index
    %167 = vector.load %arg9[%c0_30, %c0_31] : memref<1x8xf32, #tpu.memory_space<vmem>>, vector<1x8xf32>
    %168 = vector.shape_cast %167 : vector<1x8xf32> to vector<1x1x8xf32>
    %169 = vector.broadcast %168 : vector<1x1x8xf32> to vector<8x8x8xf32>
    %170 = arith.addf %166, %169 : vector<8x8x8xf32>
    %c0_32 = arith.constant 0 : index
    %c0_33 = arith.constant 0 : index
    %c0_34 = arith.constant 0 : index
    %171 = tpu.strided_load %arg1[%c0_32, %c0_33, %c0_34] {strides = array<i32: 1, 2, 1>} : memref<8x16x4xf32, #tpu.memory_space<vmem>>, vector<8x8x4xf32>
    %c0_35 = arith.constant 0 : index
    %c0_36 = arith.constant 0 : index
    %172 = vector.load %arg10[%c0_35, %c0_36] : memref<4x8xf32, #tpu.memory_space<vmem>>, vector<4x8xf32>
    %173 = vector.extract_strided_slice %171 {offsets = [0, 0, 0], sizes = [8, 8, 1], strides = [1, 1, 1]} : vector<8x8x4xf32> to vector<8x8x1xf32>
    %174 = vector.extract_strided_slice %172 {offsets = [0, 0], sizes = [1, 8], strides = [1, 1]} : vector<4x8xf32> to vector<1x8xf32>
    %175 = vector.shape_cast %174 : vector<1x8xf32> to vector<1x1x8xf32>
    %176 = vector.broadcast %173 : vector<8x8x1xf32> to vector<8x8x8xf32>
    %177 = vector.broadcast %175 : vector<1x1x8xf32> to vector<8x8x8xf32>
    %178 = arith.mulf %176, %177 : vector<8x8x8xf32>
    %179 = vector.extract_strided_slice %171 {offsets = [0, 0, 1], sizes = [8, 8, 1], strides = [1, 1, 1]} : vector<8x8x4xf32> to vector<8x8x1xf32>
    %180 = vector.extract_strided_slice %172 {offsets = [1, 0], sizes = [1, 8], strides = [1, 1]} : vector<4x8xf32> to vector<1x8xf32>
    %181 = vector.shape_cast %180 : vector<1x8xf32> to vector<1x1x8xf32>
    %182 = vector.broadcast %179 : vector<8x8x1xf32> to vector<8x8x8xf32>
    %183 = vector.broadcast %181 : vector<1x1x8xf32> to vector<8x8x8xf32>
    %184 = arith.mulf %182, %183 : vector<8x8x8xf32>
    %185 = arith.addf %178, %184 : vector<8x8x8xf32>
    %186 = vector.extract_strided_slice %171 {offsets = [0, 0, 2], sizes = [8, 8, 1], strides = [1, 1, 1]} : vector<8x8x4xf32> to vector<8x8x1xf32>
    %187 = vector.extract_strided_slice %172 {offsets = [2, 0], sizes = [1, 8], strides = [1, 1]} : vector<4x8xf32> to vector<1x8xf32>
    %188 = vector.shape_cast %187 : vector<1x8xf32> to vector<1x1x8xf32>
    %189 = vector.broadcast %186 : vector<8x8x1xf32> to vector<8x8x8xf32>
    %190 = vector.broadcast %188 : vector<1x1x8xf32> to vector<8x8x8xf32>
    %191 = arith.mulf %189, %190 : vector<8x8x8xf32>
    %192 = arith.addf %185, %191 : vector<8x8x8xf32>
    %193 = vector.extract_strided_slice %171 {offsets = [0, 0, 3], sizes = [8, 8, 1], strides = [1, 1, 1]} : vector<8x8x4xf32> to vector<8x8x1xf32>
    %194 = vector.extract_strided_slice %172 {offsets = [3, 0], sizes = [1, 8], strides = [1, 1]} : vector<4x8xf32> to vector<1x8xf32>
    %195 = vector.shape_cast %194 : vector<1x8xf32> to vector<1x1x8xf32>
    %196 = vector.broadcast %193 : vector<8x8x1xf32> to vector<8x8x8xf32>
    %197 = vector.broadcast %195 : vector<1x1x8xf32> to vector<8x8x8xf32>
    %198 = arith.mulf %196, %197 : vector<8x8x8xf32>
    %199 = arith.addf %192, %198 : vector<8x8x8xf32>
    %c0_37 = arith.constant 0 : index
    %c0_38 = arith.constant 0 : index
    %200 = vector.load %arg11[%c0_37, %c0_38] : memref<1x8xf32, #tpu.memory_space<vmem>>, vector<1x8xf32>
    %201 = vector.shape_cast %200 : vector<1x8xf32> to vector<1x1x8xf32>
    %202 = vector.broadcast %201 : vector<1x1x8xf32> to vector<8x8x8xf32>
    %203 = arith.addf %199, %202 : vector<8x8x8xf32>
    %204 = arith.addf %170, %203 : vector<8x8x8xf32>
    %cst_39 = arith.constant 0.000000e+00 : f32
    %205 = vector.broadcast %cst_39 : f32 to vector<8x8x8xf32>
    %206 = arith.maximumf %204, %205 : vector<8x8x8xf32>
    %c0_40 = arith.constant 0 : index
    %c0_41 = arith.constant 0 : index
    %c0_42 = arith.constant 0 : index
    %207 = vector.load %arg12[%c0_40, %c0_41, %c0_42] : memref<8x8x8xf32, #tpu.memory_space<vmem>>, vector<8x8x8xf32>
    tpu.vector_store %arg12[%c0_40, %c0_41, %c0_42], %206 {strides = array<i32>} : memref<8x8x8xf32, #tpu.memory_space<vmem>>, vector<8x8x8xf32>,
    return
  }
  func.func @transform_0(%arg0: i32) -> (i32, i32, i32) {
    %c0_i32 = arith.constant 0 : i32
    %c0_i32_0 = arith.constant 0 : i32
    %c0_i32_1 = arith.constant 0 : i32
    return %arg0, %c0_i32, %c0_i32_0 : i32, i32, i32
  }
  func.func @transform_1(%arg0: i32) -> (i32, i32) {
    %c0_i32 = arith.constant 0 : i32
    %c0_i32_0 = arith.constant 0 : i32
    %c0_i32_1 = arith.constant 0 : i32
    return %c0_i32, %c0_i32_0 : i32, i32
  }
  func.func @transform_2(%arg0: i32) -> (i32, i32) {
    %c0_i32 = arith.constant 0 : i32
    %c0_i32_0 = arith.constant 0 : i32
    %c0_i32_1 = arith.constant 0 : i32
    return %c0_i32, %c0_i32_0 : i32, i32
  }
  func.func @transform_3(%arg0: i32) -> (i32, i32) {
    %c0_i32 = arith.constant 0 : i32
    %c0_i32_0 = arith.constant 0 : i32
    %c0_i32_1 = arith.constant 0 : i32
    return %c0_i32, %c0_i32_0 : i32, i32
  }
  func.func @transform_4(%arg0: i32) -> (i32, i32) {
    %c0_i32 = arith.constant 0 : i32
    %c0_i32_0 = arith.constant 0 : i32
    %c0_i32_1 = arith.constant 0 : i32
    return %c0_i32, %c0_i32_0 : i32, i32
  }
  func.func @transform_5(%arg0: i32) -> (i32, i32) {
    %c0_i32 = arith.constant 0 : i32
    %c0_i32_0 = arith.constant 0 : i32
    %c0_i32_1 = arith.constant 0 : i32
    return %c0_i32, %c0_i32_0 : i32, i32
  }
  func.func @transform_6(%arg0: i32) -> (i32, i32) {
    %c0_i32 = arith.constant 0 : i32
    %c0_i32_0 = arith.constant 0 : i32
    %c0_i32_1 = arith.constant 0 : i32
    return %c0_i32, %c0_i32_0 : i32, i32
  }
  func.func @transform_7(%arg0: i32) -> (i32, i32) {
    %c0_i32 = arith.constant 0 : i32
    %c0_i32_0 = arith.constant 0 : i32
    %c0_i32_1 = arith.constant 0 : i32
    return %c0_i32, %c0_i32_0 : i32, i32
  }
  func.func @transform_8(%arg0: i32) -> (i32, i32) {
    %c0_i32 = arith.constant 0 : i32
    %c0_i32_0 = arith.constant 0 : i32
    %c0_i32_1 = arith.constant 0 : i32
    return %c0_i32, %c0_i32_0 : i32, i32
  }
  func.func @transform_9(%arg0: i32) -> (i32, i32) {
    %c0_i32 = arith.constant 0 : i32
    %c0_i32_0 = arith.constant 0 : i32
    %c0_i32_1 = arith.constant 0 : i32
    return %c0_i32, %c0_i32_0 : i32, i32
  }
  func.func @transform_10(%arg0: i32) -> (i32, i32) {
    %c0_i32 = arith.constant 0 : i32
    %c0_i32_0 = arith.constant 0 : i32
    %c0_i32_1 = arith.constant 0 : i32
    return %c0_i32, %c0_i32_0 : i32, i32
  }
  func.func @transform_11(%arg0: i32) -> (i32, i32, i32) {
    %c0_i32 = arith.constant 0 : i32
    %c0_i32_0 = arith.constant 0 : i32
    %c0_i32_1 = arith.constant 0 : i32
    return %arg0, %c0_i32, %c0_i32_0 : i32, i32, i32
  }
}

</mosaic_0001>

<bundles_post_ra>
// kernel: tpu_custom_call.1
= control target key start
LH: loop header
LB: loop body
LE: loop exit
PB: predicated region body
PF: predicated region fallthrough
CT: control target
= control target key end

     0   :  { %s1763_s17 = smov 0   ;;  %s2563_s0 = inlined_call_operand.vmem [shape: f32[32,16,4], index: 0, kind: input, shape index: {}]   ;;  %s2564_s1 = inlined_call_operand.vmem [shape: f32[3,4], index: 1, kind: input, shape index: {}]   ;;  %s2565_s2 = inlined_call_operand.vmem [shape: f32[1,4], index: 2, kind: input, shape index: {}]   ;;  %s2566_s3 = inlined_call_operand.vmem [shape: f32[4,8], index: 3, kind: input, shape index: {}]   ;;  %s2567_s4 = inlined_call_operand.vmem [shape: f32[1,8], index: 4, kind: input, shape index: {}]   ;;  %s2568_s5 = inlined_call_operand.vmem [shape: f32[3,8], index: 5, kind: input, shape index: {}]   ;;  %s2569_s6 = inlined_call_operand.vmem [shape: f32[1,8], index: 6, kind: input, shape index: {}]   ;;  %s2570_s7 = inlined_call_operand.vmem [shape: f32[8,8], index: 7, kind: input, shape index: {}]   ;;  %s2571_s8 = inlined_call_operand.vmem [shape: f32[1,8], index: 8, kind: input, shape index: {}]   ;;  %s2572_s9 = inlined_call_operand.vmem [shape: f32[4,8], index: 9, kind: input, shape index: {}]   ;;  %s2573_s10 = inlined_call_operand.vmem [shape: f32[1,8], index: 10, kind: input, shape index: {}]   ;;  %s2574_s11 = inlined_call_operand.vmem [shape: f32[32,8,8], index: 11, kind: output, shape index: {}]  }
   0x1 LB: > { %s1609_s18 = sadd.s32 4294967295, %s1693_s17   ;;  %p1613_p0 = scmp.ge.s32.totalorder %s1693_s17, 1  ;;  %s1693_s17 = sphi %s1763_s17, %s21_s17  }
   0x2   : > { %p339_p1 = scmp.lt.s32.totalorder %s1693_s17, 5 }
   0x4   : > { %p340_p2 = pnand %p1613_p0, %p339_p1 }
   0x6   : > { %343 = sbr.rel (%p340_p2) target bundleno = 599 (0x257), region = 64 }
   0xd   : > { %s1614_s19 = sshll.u32 %s1609_s18, 3  ;;  %v394_v0 = vlaneseq  ;;  %v1695_v1 = vmov 1   ;;  %v1696_v2 = vmov 0   ;;  %v393_v4 = vld [vmem:[%s2564_s1] sm:$0x7]  ;;  %vm1544_vm2 = vcmask 64512  }
   0xe   : > { %1659 = vset.pattern.permute.xlu0 %v1695_v1  ;;  %1658 = vset.pattern.permute.xlu1 %v1696_v2  ;;  %p381_p3 = scmp.lt.s32.totalorder %s1614_s19, 31  ;;  %v1844_v36 = vld [vmem:[%s2565_s2] ss:$0 sm:$0xff] }
   0xf   : > { %v1773_v3 = vshrl.u32 %v394_v0, 7 }
  0x10   : > { %s2586_s19 = smov (!%p381_p3, %s1614_s19), 31 }
  0x11   : > { %v1781_v5 = vsub.s32 1, %v1773_v3  ;;  %v1784_v6 = vsub.s32 2, %v1773_v3  ;;  %v1787_v7 = vsub.s32 0, %v1773_v3  ;;  %s1641_s22 = sshll.u32 %s2586_s19, 4  ;;  %vm467_vm0 = vcmp.ge.s32.totalorder %v1773_v3, 1  ;;  %s1618_s27 = sshll.u32 %s2586_s19, 3 }
  0x12   : > { %s1793_s25 = scalar_lea.vmem %s2563_s0, %s1641_s22  ;;  %vm817_vm1 = vcmp.lt.s32.totalorder %v1773_v3, 7  ;;  %s2485_s30 = scalar_lea.vmem %s2574_s11, %s1618_s27 }
  0x13   : > { %v1796_v8 = vrot.slane %v393_v4, %v1781_v5  ;;  %v1799_v9 = vrot.slane %v393_v4, %v1784_v6  ;;  %v1803_v10 = vld [vmem:[%s1793_s25 + $0x20] ss:$2 sm:$0xff]  ;;  %v1628_v11 = vld [vmem:[%s1793_s25 + $0x21] ss:$2 sm:$0xff]  ;;  %v1807_v12 = vrot.slane %v393_v4, %v1787_v7  ;;  %v1819_v19 = vld [vmem:[%s1793_s25 + $0x30] ss:$2 sm:$0xff] }
  0x14   : > { %v1810_v13 = vld [vmem:[%s1793_s25] ss:$2 sm:$0xff]  ;;  %v461_v16 = vrot.slane %v1628_v11, 7  ;;  %v1626_v18 = vld [vmem:[%s1793_s25 + $0x1] ss:$2 sm:$0xff] }
  0x15   : > { %v417_v14 = vmul.f32 %v1803_v10, %v1796_v8  ;;  %v445_v15 = vmul.f32 %v1628_v11, %v1799_v9  ;;  %v415_v17 = vmul.f32 %v1796_v8, %v1810_v13  ;;  %v443_v20 = vmul.f32 %v1626_v18, %v1799_v9  ;;  %v1629_v23 = vld [vmem:[%s1793_s25 + $0x31] ss:$2 sm:$0xff]  ;;  %v1826_v24 = vld [vmem:[%s1793_s25 + $0x50] ss:$2 sm:$0xff]  ;;  %v1630_v63 = vld [vmem:[%s1793_s25 + $0x41] ss:$2 sm:$0xff] }
  0x16   : > { %v459_v21 = vrot.slane %v1626_v18, 7  ;;  %v418_v22 = vmul.f32 %v1819_v19, %v1796_v8  ;;  %v474_v26 = vsel %vm467_vm0, %v461_v16, 0.0  ;;  %v446_v27 = vmul.f32 %v1629_v23, %v1799_v9  ;;  %v1631_v29 = vld [vmem:[%s1793_s25 + $0x51] ss:$2 sm:$0xff]  ;;  %v1833_v30 = vld [vmem:[%s1793_s25 + $0x70] ss:$2 sm:$0xff] }
  0x17   : > { %v453_v25 = vadd.f32 %v445_v15, %v417_v14  ;;  %v462_v28 = vrot.slane %v1629_v23, 7  ;;  %v486_v31 = vmul.f32 %v1807_v12, %v474_v26  ;;  %v451_v32 = vadd.f32 %v443_v20, %v415_v17  ;;  %v1633_v35 = vld [vmem:[%s1793_s25 + $0x71] ss:$2 sm:$0xff]  ;;  %v1851_v41 = vld [vmem:[%s1793_s25 + $0x10] ss:$2 sm:$0xff] }
  0x18   : > { %v472_v33 = vsel %vm467_vm0, %v459_v21, 0.0  ;;  %v420_v34 = vmul.f32 %v1826_v24, %v1796_v8  ;;  %v454_v38 = vadd.f32 %v446_v27, %v418_v22  ;;  %v448_v40 = vmul.f32 %v1631_v29, %v1799_v9  ;;  %v1627_v50 = vld [vmem:[%s1793_s25 + $0x11] ss:$2 sm:$0xff]  ;;  %v1876_v14 = vld [vmem:[%s1793_s25 + $0x40] ss:$2 sm:$0xff] }
  0x19   : > { %v484_v37 = vmul.f32 %v1807_v12, %v472_v33  ;;  %v475_v39 = vsel %vm467_vm0, %v462_v28, 0.0  ;;  %v494_v42 = vadd.f32 %v486_v31, %v453_v25  ;;  %v464_v44 = vrot.slane %v1631_v29, 7  ;;  %v1632_v17 = vld [vmem:[%s1793_s25 + $0x61] ss:$2 sm:$0xff]  ;;  %v1891_v28 = vld [vmem:[%s1793_s25 + $0x60] ss:$2 sm:$0xff] }
  0x1a   : > { %v487_v43 = vmul.f32 %v1807_v12, %v475_v39  ;;  %v422_v45 = vmul.f32 %v1833_v30, %v1796_v8  ;;  %v456_v47 = vadd.f32 %v448_v40, %v420_v34  ;;  %v450_v48 = vmul.f32 %v1633_v35, %v1799_v9 }
  0x1b   : > { %v492_v46 = vadd.f32 %v484_v37, %v451_v32  ;;  %v466_v49 = vrot.slane %v1633_v35, 7  ;;  %v509_v51 = vadd.f32 %v1844_v36, %v494_v42  ;;  %v477_v53 = vsel %vm467_vm0, %v464_v44, 0.0 }
  0x1c   : > { %v495_v52 = vadd.f32 %v487_v43, %v454_v38  ;;  %v416_v54 = vmul.f32 %v1851_v41, %v1796_v8  ;;  %v489_v56 = vmul.f32 %v1807_v12, %v477_v53  ;;  %v458_v57 = vadd.f32 %v450_v48, %v422_v45 }
  0x1d   : > { %v507_v55 = vadd.f32 %v1844_v36, %v492_v46  ;;  %v479_v58 = vsel %vm467_vm0, %v466_v49, 0.0  ;;  %v1867_v59 = vmax.f32 %v509_v51, 0.0  ;;  %v444_v62 = vmul.f32 %v1627_v50, %v1799_v9 }
  0x1e   : > { %v510_v60 = vadd.f32 %v1844_v36, %v495_v52  ;;  %v491_v61 = vmul.f32 %v1807_v12, %v479_v58  ;;  %v497_v4 = vadd.f32 %v489_v56, %v456_v47  ;;  %v460_v11 = vrot.slane %v1627_v50, 7 }
  0x1f   : > { %v1873_v0 = vmax.f32 %v507_v55, 0.0  ;;  %536 = vperm.xlu1 %1658, %v1867_v59   ;;  %v452_v20 = vadd.f32 %v444_v62, %v416_v54  ;;  %v463_v22 = vrot.slane %v1630_v63, 7  ;;  %v419_v25 = vmul.f32 %v1876_v14, %v1796_v8 }
  0x20   : > { %v518_v15 = vmax.f32 %v510_v60, 0.0  ;;  %v499_v16 = vadd.f32 %v491_v61, %v458_v57  ;;  %v512_v18 = vadd.f32 %v1844_v36, %v497_v4  ;;  %v473_v21 = vsel %vm467_vm0, %v460_v11, 0.0  ;;  %v523_v11 = vld [vmem:[%s2566_s3] sm:$0xf] }
  0x21   : > { %577 = vperm.xlu0 %1659, %v1873_v0   ;;  %v485_v23 = vmul.f32 %v1807_v12, %v473_v21  ;;  %v447_v26 = vmul.f32 %v1630_v63, %v1799_v9  ;;  %v476_v27 = vsel %vm467_vm0, %v463_v22, 0.0  ;;  %v465_v29 = vrot.slane %v1632_v17, 7 }
  0x22   : > { %v520_v31 = vmax.f32 %v512_v18, 0.0  ;;  %v514_v32 = vadd.f32 %v1844_v36, %v499_v16  ;;  %v488_v35 = vmul.f32 %v1807_v12, %v476_v27  ;;  %v421_v37 = vmul.f32 %v1891_v28, %v1796_v8 }
  0x23   : > { %541 = vperm.xlu1 %1658, %v518_v15   ;;  %v493_v33 = vadd.f32 %v485_v23, %v452_v20  ;;  %v455_v34 = vadd.f32 %v447_v26, %v419_v25  ;;  %v449_v38 = vmul.f32 %v1632_v17, %v1799_v9  ;;  %v478_v39 = vsel %vm467_vm0, %v465_v29, 0.0 }
  0x24   : > { %v522_v40 = vmax.f32 %v514_v32, 0.0  ;;  %v490_v45 = vmul.f32 %v1807_v12, %v478_v39  ;;  %v1697_v9 = vmov 2   ;;  %v1698_v50 = vmov 3   ;;  %v1951_v39 = vld [vmem:[%s2567_s4] ss:$0 sm:$0xff] }
  0x25   : > { %589 = vperm.xlu0 %1659, %v518_v15   ;;  %v508_v42 = vadd.f32 %v1844_v36, %v493_v33  ;;  %v496_v43 = vadd.f32 %v488_v35, %v455_v34  ;;  %v457_v44 = vadd.f32 %v449_v38, %v421_v37  ;;  %v1931_v16 = vrot.slane %v523_v11, %v1781_v5 }
  0x26   : > { %v1934_v18 = vrot.slane %v523_v11, %v1787_v7  ;;  %v1937_v20 = vsub.s32 3, %v1773_v3  ;;  %v663_v26 = vrot.slane %v523_v11, %v1784_v6 }
  0x27   : > { %551 = vperm.xlu1 %1658, %v520_v31   ;;  %v516_v46 = vmax.f32 %v508_v42, 0.0  ;;  %v511_v47 = vadd.f32 %v1844_v36, %v496_v43  ;;  %v498_v8 = vadd.f32 %v490_v45, %v457_v44 }
  0x28   : > { %v1943_v27 = vrot.slane %v523_v11, %v1937_v20  ;;  %v755_v11 = vld [vmem:[%s2568_s5] sm:$0x7] }
  0x29   : > { %597 = vperm.xlu0 %1659, %v520_v31   ;;  %v519_v48 = vmax.f32 %v511_v47, 0.0  ;;  %v513_v49 = vadd.f32 %v1844_v36, %v498_v8 }
  0x2b   : > { %561 = vperm.xlu1 %1658, %v522_v40   ;;  %v521_v12 = vmax.f32 %v513_v49, 0.0 }
  0x2d   : > { %605 = vperm.xlu0 %1659, %v522_v40  }
  0x2f   : > { %1660 = vset.pattern.permute.xlu1 %v1695_v1 }
  0x30   : > { %581 = vperm.xlu1 %1660, %v516_v46  }
  0x31   : > { %1662 = vset.pattern.permute.xlu0 %v1697_v9 }
  0x32   : > { %633 = vperm.xlu0 %1662, %v516_v46  }
  0x34   : > { %585 = vperm.xlu1 %1660, %v1867_v59  }
  0x36   : > { %645 = vperm.xlu0 %1662, %v519_v48  }
  0x38   : > { %593 = vperm.xlu1 %1660, %v519_v48  }
  0x3a   : > { %653 = vperm.xlu0 %1662, %v521_v12  }
  0x3c   : > { %601 = vperm.xlu1 %1660, %v521_v12  }
  0x3e   : > { %1663 = vset.pattern.permute.xlu0 %v1698_v50 }
  0x3f   : > { %681 = vperm.xlu0 %1663, %v1873_v0  }
  0x40   : > { %1661 = vset.pattern.permute.xlu1 %v1697_v9 }
  0x41   : > { %629 = vperm.xlu1 %1661, %v1873_v0  }
  0x43   : > { %693 = vperm.xlu0 %1663, %v518_v15  }
  0x45   : > { %637 = vperm.xlu1 %1661, %v1867_v59  }
  0x47   : > { %701 = vperm.xlu0 %1663, %v520_v31  }
  0x49   : > { %641 = vperm.xlu1 %1661, %v518_v15  }
  0x4b   : > { %709 = vperm.xlu0 %1663, %v522_v40  }
  0x4d   : > { %649 = vperm.xlu1 %1661, %v520_v31  }
  0x4f   : > { %1665 = vset.pattern.permute.xlu0 %v1696_v2 }
  0x50   : > { %526 = vperm.xlu0 %1665, %v1873_v0  }
  0x51   : > { %657 = vperm.xlu1 %1661, %v522_v40  }
  0x54   : > { %531 = vperm.xlu0 %1665, %v516_v46  }
  0x55   : > { %1664 = vset.pattern.permute.xlu1 %v1698_v50 }
  0x56   : > { %685 = vperm.xlu1 %1664, %v516_v46  }
  0x58   : > { %546 = vperm.xlu0 %1665, %v519_v48  }
  0x5a   : > { %689 = vperm.xlu1 %1664, %v1867_v59  }
  0x5c   : > { %556 = vperm.xlu0 %1665, %v521_v12  }
  0x5e   : > { %697 = vperm.xlu1 %1664, %v519_v48  }
  0x62   : > { %705 = vperm.xlu1 %1664, %v521_v12  }
  0x66   : > { %1666 = vset.pattern.permute.xlu1 %v1696_v2 }
  0x9e   : > { %v1917_v36 = vpop.permute.xlu1 %536 }
  0xa0   : > { %v578_v51 = vpop.permute.xlu0 %577 }
  0xa1   : > { %v612_v46 = vmul.f32 %v1931_v16, %v578_v51 }
  0xa2   : > { %v542_v52 = vpop.permute.xlu1 %541 }
  0xa3   : > { %v571_v22 = vmul.f32 %v1934_v18, %v542_v52 }
  0xa4   : > { %v590_v53 = vpop.permute.xlu0 %589 }
  0xa5   : > { %v615_v23 = vmul.f32 %v1931_v16, %v590_v53 }
  0xa6   : > { %v552_v54 = vpop.permute.xlu1 %551 }
  0xa7   : > { %v623_v31 = vadd.f32 %v615_v23, %v571_v22  ;;  %v573_v32 = vmul.f32 %v1934_v18, %v552_v54 }
  0xa8   : > { %v598_v55 = vpop.permute.xlu0 %597 }
  0xa9   : > { %v617_v33 = vmul.f32 %v1931_v16, %v598_v55 }
  0xaa   : > { %v562_v56 = vpop.permute.xlu1 %561 }
  0xab   : > { %v625_v42 = vadd.f32 %v617_v33, %v573_v32  ;;  %v575_v53 = vmul.f32 %v1934_v18, %v562_v56  ;;  %v1971_v32 = vrot.slane %v755_v11, %v1787_v7 }
  0xac   : > { %v606_v57 = vpop.permute.xlu0 %605 }
  0xad   : > { %v619_v54 = vmul.f32 %v1931_v16, %v606_v57 }
  0xaf   : > { %v582_v58 = vpop.permute.xlu1 %581 }
  0xb0   : > { %v613_v56 = vmul.f32 %v1931_v16, %v582_v58 }
  0xb1   : > { %v634_v60 = vpop.permute.xlu0 %633 }
  0xb3   : > { %v586_v61 = vpop.permute.xlu1 %585 }
  0xb4   : > { %v614_v57 = vmul.f32 %v1931_v16, %v586_v61 }
  0xb5   : > { %v1919_v62 = vpop.permute.xlu0 %645 }
  0xb7   : > { %v1921_v59 = vpop.permute.xlu1 %593 }
  0xb9   : > { %v1923_v63 = vpop.permute.xlu0 %653 }
  0xbb   : > { %v1925_v0 = vpop.permute.xlu1 %601 }
  0xbe   : > { %v682_v4 = vpop.permute.xlu0 %681 }
  0xbf   : > { %v716_v23 = vmul.f32 %v1943_v27, %v682_v4  ;;  %v1976_v4 = vrot.slane %v755_v11, %v1784_v6 }
  0xc0   : > { %v630_v15 = vpop.permute.xlu1 %629 }
  0xc1   : > { %v664_v55 = vmul.f32 %v663_v26, %v630_v15  ;;  %v1968_v15 = vrot.slane %v755_v11, %v1781_v5 }
  0xc2   : > { %v694_v17 = vpop.permute.xlu0 %693 }
  0xc3   : > { %v719_v37 = vmul.f32 %v1943_v27, %v694_v17 }
  0xc4   : > { %v638_v21 = vpop.permute.xlu1 %637 }
  0xc6   : > { %v702_v25 = vpop.permute.xlu0 %701 }
  0xc7   : > { %v721_v12 = vmul.f32 %v1943_v27, %v702_v25 }
  0xc8   : > { %v642_v29 = vpop.permute.xlu1 %641 }
  0xc9   : > { %v667_v34 = vmul.f32 %v663_v26, %v642_v29 }
  0xca   : > { %v710_v35 = vpop.permute.xlu0 %709 }
  0xcb   : > { %v675_v38 = vadd.f32 %v667_v34, %v623_v31  ;;  %v570_v34 = vmul.f32 %v1934_v18, %v1917_v36  ;;  %v668_v36 = vmul.f32 %v663_v26, %v1919_v62  ;;  %v618_v62 = vmul.f32 %v1931_v16, %v1925_v0 }
  0xcc   : > { %v650_v40 = vpop.permute.xlu1 %649 }
  0xcd   : > { %v727_v43 = vadd.f32 %v719_v37, %v675_v38  ;;  %v669_v44 = vmul.f32 %v663_v26, %v650_v40  ;;  %v627_v37 = vadd.f32 %v619_v54, %v575_v53  ;;  %v665_v40 = vmul.f32 %v663_v26, %v634_v60 }
  0xce   : > { %v616_v60 = vmul.f32 %v1931_v16, %v1921_v59 }
  0xcf   : > { %v527_v45 = vpop.permute.xlu0 %526  ;;  %v742_v47 = vadd.f32 %v1951_v39, %v727_v43  ;;  %v677_v8 = vadd.f32 %v669_v44, %v625_v42  ;;  %v666_v44 = vmul.f32 %v663_v26, %v638_v21  ;;  %v670_v21 = vmul.f32 %v663_v26, %v1923_v63 }
  0xd0   : > { %v568_v48 = vmul.f32 %v1934_v18, %v527_v45  ;;  %v658_v49 = vpop.permute.xlu1 %657 }
  0xd1   : > { %v750_v51 = vmax.f32 %v742_v47, 0.0  ;;  %v729_v22 = vadd.f32 %v721_v12, %v677_v8  ;;  %v671_v31 = vmul.f32 %v663_v26, %v658_v49  ;;  %v622_v8 = vadd.f32 %v614_v57, %v570_v34 }
  0xd2   : > { %v620_v52 = vadd.f32 %v612_v46, %v568_v48 }
  0xd3   : > { %v532_v17 = vpop.permute.xlu0 %531  ;;  %v771_v42 = vrot.slane %v750_v51, 7  ;;  %v744_v58 = vadd.f32 %v1951_v39, %v729_v22  ;;  %v679_v46 = vadd.f32 %v671_v31, %v627_v37  ;;  %v811_v48 = vrot.slane %v750_v51, 1 }
  0xd4   : > { %v672_v29 = vadd.f32 %v664_v55, %v620_v52  ;;  %v569_v25 = vmul.f32 %v1934_v18, %v532_v17  ;;  %v723_v52 = vmul.f32 %v1943_v27, %v710_v35  ;;  %v674_v22 = vadd.f32 %v666_v44, %v622_v8 }
  0xd5   : > { %v686_v33 = vpop.permute.xlu1 %685  ;;  %v783_v55 = vsel %vm467_vm0, %v771_v42, 0.0  ;;  %v752_v11 = vmax.f32 %v744_v58, 0.0  ;;  %v763_v59 = vmul.f32 %v1968_v15, %v750_v51  ;;  %v824_v35 = vsel %vm817_vm1, %v811_v48, 0.0 }
  0xd6   : > { %v724_v38 = vadd.f32 %v716_v23, %v672_v29  ;;  %v621_v61 = vadd.f32 %v613_v56, %v569_v25  ;;  %v717_v47 = vmul.f32 %v1943_v27, %v686_v33  ;;  %v731_v29 = vadd.f32 %v723_v52, %v679_v46 }
  0xd7   : > { %v547_v43 = vpop.permute.xlu0 %546  ;;  %v795_v26 = vmul.f32 %v1971_v32, %v783_v55  ;;  %v773_v16 = vrot.slane %v752_v11, 7  ;;  %v813_v42 = vrot.slane %v752_v11, 1 }
  0xd8   : > { %v739_v45 = vadd.f32 %v1951_v39, %v724_v38  ;;  %v673_v49 = vadd.f32 %v665_v40, %v621_v61  ;;  %v572_v54 = vmul.f32 %v1934_v18, %v547_v43  ;;  %v836_v38 = vmul.f32 %v1976_v4, %v824_v35 }
  0xd9   : > { %v690_v12 = vpop.permute.xlu1 %689  ;;  %v765_v40 = vmul.f32 %v1968_v15, %v752_v11  ;;  %v746_v58 = vadd.f32 %v1951_v39, %v731_v29  ;;  %v803_v46 = vadd.f32 %v795_v26, %v763_v59 }
  0xda   : > { %v747_v53 = vmax.f32 %v739_v45, 0.0  ;;  %v725_v17 = vadd.f32 %v717_v47, %v673_v49  ;;  %v718_v25 = vmul.f32 %v1943_v27, %v690_v12  ;;  %v624_v0 = vadd.f32 %v616_v60, %v572_v54  ;;  %v2014_v54 = vld [vmem:[%s2569_s6] ss:$0 sm:$0xff] }
  0xdb   : > { %v557_v37 = vpop.permute.xlu0 %556  ;;  %v785_v12 = vsel %vm467_vm0, %v773_v16, 0.0  ;;  %v754_v55 = vmax.f32 %v746_v58, 0.0 }
  0xdc   : > { %v768_v23 = vrot.slane %v747_v53, 7  ;;  %v808_v31 = vrot.slane %v747_v53, 1  ;;  %v740_v57 = vadd.f32 %v1951_v39, %v725_v17  ;;  %v760_v33 = vmul.f32 %v1968_v15, %v747_v53 }
  0xdd   : > { %v698_v63 = vpop.permute.xlu1 %697  ;;  %v726_v45 = vadd.f32 %v718_v25, %v674_v22  ;;  %v676_v47 = vadd.f32 %v668_v36, %v624_v0  ;;  %v574_v8 = vmul.f32 %v1934_v18, %v557_v37  ;;  %v797_v59 = vmul.f32 %v1971_v32, %v785_v12 }
  0xde   : > { %v780_v56 = vsel %vm467_vm0, %v768_v23, 0.0  ;;  %v821_v34 = vsel %vm817_vm1, %v808_v31, 0.0  ;;  %v748_v44 = vmax.f32 %v740_v57, 0.0  ;;  %v720_v48 = vmul.f32 %v1943_v27, %v698_v63 }
  0xdf   : > { %v792_v51 = vmul.f32 %v1971_v32, %v780_v56  ;;  %v833_v43 = vmul.f32 %v1976_v4, %v821_v34  ;;  %v741_v11 = vadd.f32 %v1951_v39, %v726_v45  ;;  %v626_v36 = vadd.f32 %v618_v62, %v574_v8 }
  0xe0   : > { %v769_v52 = vrot.slane %v748_v44, 7  ;;  %v809_v53 = vrot.slane %v748_v44, 1  ;;  %v728_v17 = vadd.f32 %v720_v48, %v676_v47  ;;  %v761_v35 = vmul.f32 %v1968_v15, %v748_v44 }
  0xe1   : > { %v800_v61 = vadd.f32 %v792_v51, %v760_v33  ;;  %v706_v49 = vpop.permute.xlu1 %705  ;;  %v749_v25 = vmax.f32 %v741_v11, 0.0  ;;  %v826_v62 = vsel %vm817_vm1, %v813_v42, 0.0  ;;  %v678_v26 = vadd.f32 %v670_v21, %v626_v36 }
  0xe2   : > { %v781_v22 = vsel %vm467_vm0, %v769_v52, 0.0  ;;  %v822_v23 = vsel %vm817_vm1, %v809_v53, 0.0  ;;  %v722_v29 = vmul.f32 %v1943_v27, %v706_v49  ;;  %v743_v56 = vadd.f32 %v1951_v39, %v728_v17 }
  0xe3   : > { %v841_v60 = vadd.f32 %v833_v43, %v800_v61  ;;  %v793_v31 = vmul.f32 %v1971_v32, %v781_v22  ;;  %v775_v57 = vrot.slane %v754_v55, 7  ;;  %v834_v16 = vmul.f32 %v1976_v4, %v822_v23 }
  0xe4   : > { %v770_v27 = vrot.slane %v749_v25, 7  ;;  %v844_v33 = vadd.f32 %v836_v38, %v803_v46  ;;  %v810_v51 = vrot.slane %v749_v25, 1  ;;  %v751_v34 = vmax.f32 %v743_v56, 0.0 }
  0xe5   : > { %v856_v18 = vadd.f32 %v2014_v54, %v841_v60  ;;  %v801_v0 = vadd.f32 %v793_v31, %v761_v35  ;;  %v730_v37 = vadd.f32 %v722_v29, %v678_v26  ;;  %v805_v58 = vadd.f32 %v797_v59, %v765_v40 }
  0xe6   : > { %v815_v61 = vrot.slane %v754_v55, 1  ;;  %v782_v42 = vsel %vm467_vm0, %v770_v27, 0.0  ;;  %v762_v21 = vmul.f32 %v1968_v15, %v749_v25  ;;  %v823_v45 = vsel %vm817_vm1, %v810_v51, 0.0 }
  0xe7   : > { %v2028_v63 = vmax.f32 %v856_v18, 0.0  ;;  %v842_v43 = vadd.f32 %v834_v16, %v801_v0  ;;  %v794_v44 = vmul.f32 %v1971_v32, %v782_v42  ;;  %v772_v47 = vrot.slane %v751_v34, 7 }
  0xe8   : > { %v787_v38 = vsel %vm467_vm0, %v775_v57, 0.0  ;;  %v812_v8 = vrot.slane %v751_v34, 1  ;;  %v745_v40 = vadd.f32 %v1951_v39, %v730_v37  ;;  %v835_v49 = vmul.f32 %v1976_v4, %v823_v45 }
  0xe9   : > { %875 = vperm.xlu1 %1666, %v2028_v63   ;;  %v857_v46 = vadd.f32 %v2014_v54, %v842_v43  ;;  %v802_v48 = vadd.f32 %v794_v44, %v762_v21  ;;  %v764_v12 = vmul.f32 %v1968_v15, %v751_v34  ;;  %v784_v60 = vsel %vm467_vm0, %v772_v47, 0.0 }
  0xea   : > { %v796_v53 = vmul.f32 %v1971_v32, %v784_v60  ;;  %v825_v11 = vsel %vm817_vm1, %v812_v8, 0.0  ;;  %v753_v36 = vmax.f32 %v745_v40, 0.0  ;;  %v838_v17 = vmul.f32 %v1976_v4, %v826_v62 }
  0xeb   : > { %v2047_v52 = vmax.f32 %v857_v46, 0.0  ;;  %v799_v39 = vmul.f32 %v1971_v32, %v787_v38  ;;  %v843_v18 = vadd.f32 %v835_v49, %v802_v48  ;;  %v837_v23 = vmul.f32 %v1976_v4, %v825_v11 }
  0xec   : > { %v804_v22 = vadd.f32 %v796_v53, %v764_v12  ;;  %v774_v29 = vrot.slane %v753_v36, 7  ;;  %v814_v59 = vrot.slane %v753_v36, 1  ;;  %v859_v35 = vadd.f32 %v2014_v54, %v844_v33 }
  0xed   : > { %880 = vperm.xlu0 %1665, %v2047_v52   ;;  %v846_v31 = vadd.f32 %v838_v17, %v805_v58  ;;  %v767_v25 = vmul.f32 %v1968_v15, %v754_v55  ;;  %v858_v26 = vadd.f32 %v2014_v54, %v843_v18  ;;  %v828_v62 = vsel %vm817_vm1, %v815_v61, 0.0  ;;  %v2169_v17 = vld [vmem:[%s2570_s7] sm:$0xff] }
  0xee   : > { %v845_v56 = vadd.f32 %v837_v23, %v804_v22  ;;  %v786_v57 = vsel %vm467_vm0, %v774_v29, 0.0  ;;  %v827_v0 = vsel %vm817_vm1, %v814_v59, 0.0  ;;  %v766_v33 = vmul.f32 %v1968_v15, %v753_v36 }
  0xef   : > { %v807_v16 = vadd.f32 %v799_v39, %v767_v25  ;;  %v2065_v27 = vmax.f32 %v858_v26, 0.0  ;;  %v798_v51 = vmul.f32 %v1971_v32, %v786_v57  ;;  %v840_v34 = vmul.f32 %v1976_v4, %v828_v62 }
  0xf0   : > { %v860_v55 = vadd.f32 %v2014_v54, %v845_v56  ;;  %v839_v58 = vmul.f32 %v1976_v4, %v827_v0  ;;  %v2075_v43 = vmax.f32 %v859_v35, 0.0  ;;  %v861_v42 = vadd.f32 %v2014_v54, %v846_v31 }
  0xf1   : > { %v806_v37 = vadd.f32 %v798_v51, %v766_v33  ;;  %885 = vperm.xlu1 %1666, %v2065_v27   ;;  %v848_v21 = vadd.f32 %v840_v34, %v807_v16  ;;  %v1699_v38 = vmov 4   ;;  %v1701_v46 = vmov 6  }
  0xf2   : > { %v2073_v61 = vmax.f32 %v860_v55, 0.0  ;;  %v2081_v32 = vmax.f32 %v861_v42, 0.0  ;;  %v1702_v8 = vmov 7   ;;  %v2175_v39 = vrot.slane %v2169_v17, %v1781_v5 }
  0xf3   : > { %v847_v44 = vadd.f32 %v839_v58, %v806_v37  ;;  %v863_v4 = vadd.f32 %v2014_v54, %v848_v21  ;;  %v2179_v18 = vrot.slane %v2169_v17, %v1787_v7  ;;  %v2221_v58 = vrot.slane %v2169_v17, %v1784_v6 }
  0xf4   : > { %895 = vperm.xlu0 %1665, %v2073_v61  }
  0xf5   : > { %v862_v15 = vadd.f32 %v2014_v54, %v847_v44  ;;  %890 = vperm.xlu1 %1666, %v2075_v43   ;;  %v2088_v47 = vmax.f32 %v863_v4, 0.0  ;;  %v1700_v54 = vmov 5  }
  0xf7   : > { %v2084_v45 = vmax.f32 %v862_v15, 0.0 }
  0xf9   : > { %900 = vperm.xlu1 %1666, %v2081_v32   ;;  %905 = vperm.xlu0 %1665, %v2084_v45  }
  0xfd   : > { %910 = vperm.xlu1 %1666, %v2088_v47   ;;  %1671 = vset.pattern.permute.xlu0 %v1699_v38 }
  0xfe   : > { %1086 = vperm.xlu0 %1671, %v2047_v52  }
 0x101   : > { %1667 = vset.pattern.permute.xlu1 %v1695_v1 }
 0x102   : > { %930 = vperm.xlu1 %1667, %v2047_v52   ;;  %1098 = vperm.xlu0 %1671, %v2073_v61  }
 0x106   : > { %934 = vperm.xlu1 %1667, %v2065_v27   ;;  %1106 = vperm.xlu0 %1671, %v2084_v45  }
 0x10a   : > { %942 = vperm.xlu1 %1667, %v2073_v61   ;;  %1672 = vset.pattern.permute.xlu0 %v1700_v54 }
 0x10b   : > { %1134 = vperm.xlu0 %1672, %v2028_v63  }
 0x10e   : > { %950 = vperm.xlu1 %1667, %v2084_v45  }
 0x10f   : > { %1146 = vperm.xlu0 %1672, %v2075_v43  }
 0x112   : > { %1668 = vset.pattern.permute.xlu1 %v1697_v9 }
 0x113   : > { %978 = vperm.xlu1 %1668, %v2028_v63   ;;  %1154 = vperm.xlu0 %1672, %v2081_v32  }
 0x117   : > { %986 = vperm.xlu1 %1668, %v2065_v27   ;;  %1162 = vperm.xlu0 %1672, %v2088_v47  }
 0x11b   : > { %990 = vperm.xlu1 %1668, %v2075_v43   ;;  %1675 = vset.pattern.permute.xlu0 %v1701_v46 }
 0x11c   : > { %1190 = vperm.xlu0 %1675, %v2047_v52  }
 0x11f   : > { %998 = vperm.xlu1 %1668, %v2081_v32  }
 0x120   : > { %1202 = vperm.xlu0 %1675, %v2073_v61  }
 0x123   : > { %1006 = vperm.xlu1 %1668, %v2088_v47  }
 0x124   : > { %1210 = vperm.xlu0 %1675, %v2084_v45  }
 0x127   : > { %1669 = vset.pattern.permute.xlu1 %v1698_v50 }
 0x128   : > { %1034 = vperm.xlu1 %1669, %v2047_v52   ;;  %1678 = vset.pattern.permute.xlu0 %v1696_v2 }
 0x129   : > { %1312 = vperm.xlu0 %1678, %v1851_v41  }
 0x12c   : > { %1038 = vperm.xlu1 %1669, %v2065_v27  }
 0x12d   : > { %1327 = vperm.xlu0 %1678, %v1876_v14  }
 0x130   : > { %1046 = vperm.xlu1 %1669, %v2073_v61  }
 0x131   : > { %1337 = vperm.xlu0 %1678, %v1891_v28  }
 0x134   : > { %1054 = vperm.xlu1 %1669, %v2084_v45  }
 0x135   : > { %1679 = vset.pattern.permute.xlu0 %v1702_v8 }
 0x136   : > { %1238 = vperm.xlu0 %1679, %v2028_v63  }
 0x138   : > { %1670 = vset.pattern.permute.xlu1 %v1699_v38 }
 0x139   : > { %1082 = vperm.xlu1 %1670, %v2028_v63  }
 0x13a   : > { %1250 = vperm.xlu0 %1679, %v2075_v43  }
 0x13d   : > { %1090 = vperm.xlu1 %1670, %v2065_v27  }
 0x13e   : > { %1258 = vperm.xlu0 %1679, %v2081_v32  }
 0x141   : > { %1094 = vperm.xlu1 %1670, %v2075_v43  }
 0x142   : > { %1266 = vperm.xlu0 %1679, %v2088_v47  }
 0x145   : > { %1102 = vperm.xlu1 %1670, %v2081_v32  }
 0x146   : > { %1680 = vset.pattern.permute.xlu0 %v1695_v1 }
 0x147   : > { %926 = vperm.xlu0 %1680, %v2028_v63  }
 0x149   : > { %1110 = vperm.xlu1 %1670, %v2088_v47  }
 0x14b   : > { %938 = vperm.xlu0 %1680, %v2075_v43  }
 0x14d   : > { %1673 = vset.pattern.permute.xlu1 %v1700_v54 }
 0x14e   : > { %1138 = vperm.xlu1 %1673, %v2047_v52  }
 0x14f   : > { %946 = vperm.xlu0 %1680, %v2081_v32  }
 0x152   : > { %1142 = vperm.xlu1 %1673, %v2065_v27  }
 0x153   : > { %954 = vperm.xlu0 %1680, %v2088_v47  }
 0x156   : > { %1150 = vperm.xlu1 %1673, %v2073_v61  }
 0x157   : > { %1358 = vperm.xlu0 %1680, %v1810_v13  }
 0x15a   : > { %1158 = vperm.xlu1 %1673, %v2084_v45  }
 0x15b   : > { %1370 = vperm.xlu0 %1680, %v1819_v19  }
 0x15e   : > { %1674 = vset.pattern.permute.xlu1 %v1701_v46  ;;  %v2247_v46 = vrot.slane %v2169_v17, %v1937_v20 }
 0x15f   : > { %1186 = vperm.xlu1 %1674, %v2028_v63   ;;  %1378 = vperm.xlu0 %1680, %v1826_v24  }
 0x163   : > { %1194 = vperm.xlu1 %1674, %v2065_v27   ;;  %1386 = vperm.xlu0 %1680, %v1833_v30  }
 0x167   : > { %1198 = vperm.xlu1 %1674, %v2075_v43   ;;  %1682 = vset.pattern.permute.xlu0 %v1697_v9 }
 0x168   : > { %982 = vperm.xlu0 %1682, %v2047_v52   ;;  %v2149_v40 = vpop.permute.xlu1 %875 }
 0x16b   : > { %1206 = vperm.xlu1 %1674, %v2081_v32  }
 0x16c   : > { %994 = vperm.xlu0 %1682, %v2073_v61   ;;  %v881_v48 = vpop.permute.xlu0 %880 }
 0x16d   : > { %v918_v29 = vmul.f32 %v2179_v18, %v881_v48 }
 0x16f   : > { %1214 = vperm.xlu1 %1674, %v2088_v47  }
 0x170   : > { %v886_v49 = vpop.permute.xlu1 %885  ;;  %1002 = vperm.xlu0 %1682, %v2084_v45  }
 0x171   : > { %v919_v37 = vmul.f32 %v2179_v18, %v886_v49 }
 0x173   : > { %1676 = vset.pattern.permute.xlu1 %v1702_v8  ;;  %v896_v12 = vpop.permute.xlu0 %895 }
 0x174   : > { %v2154_v60 = vpop.permute.xlu1 %890  ;;  %1242 = vperm.xlu1 %1676, %v2047_v52   ;;  %1414 = vperm.xlu0 %1682, %v1851_v41  }
 0x178   : > { %v2158_v53 = vpop.permute.xlu1 %900  ;;  %1246 = vperm.xlu1 %1676, %v2065_v27   ;;  %1426 = vperm.xlu0 %1682, %v1876_v14   ;;  %v906_v11 = vpop.permute.xlu0 %905 }
 0x179   : > { %v923_v0 = vmul.f32 %v2179_v18, %v906_v11 }
 0x17c   : > { %v2162_v36 = vpop.permute.xlu1 %910  ;;  %1254 = vperm.xlu1 %1676, %v2073_v61   ;;  %1434 = vperm.xlu0 %1682, %v1891_v28  }
 0x17d   : > { %v2171_v52 = vpop.permute.xlu0 %1086 }
 0x180   : > { %1262 = vperm.xlu1 %1676, %v2084_v45   ;;  %1684 = vset.pattern.permute.xlu0 %v1698_v50 }
 0x181   : > { %v931_v22 = vpop.permute.xlu1 %930  ;;  %1030 = vperm.xlu0 %1684, %v2028_v63   ;;  %v2184_v23 = vpop.permute.xlu0 %1098  ;;  %v921_v63 = vmul.f32 %v2179_v18, %v896_v12 }
 0x182   : > { %v962_v59 = vmul.f32 %v2175_v39, %v931_v22 }
 0x184   : > { %v2188_v35 = vadd.f32 %v962_v59, %v918_v29  ;;  %1677 = vset.pattern.permute.xlu1 %v1696_v2 }
 0x185   : > { %v935_v31 = vpop.permute.xlu1 %934  ;;  %1307 = vperm.xlu1 %1677, %v1810_v13   ;;  %1042 = vperm.xlu0 %1684, %v2075_v43   ;;  %v2193_v25 = vpop.permute.xlu0 %1106 }
 0x186   : > { %v963_v34 = vmul.f32 %v2175_v39, %v935_v31 }
 0x188   : > { %v971_v42 = vadd.f32 %v963_v34, %v919_v37 }
 0x189   : > { %v943_v26 = vpop.permute.xlu1 %942  ;;  %1317 = vperm.xlu1 %1677, %v1803_v10   ;;  %1050 = vperm.xlu0 %1684, %v2081_v32  }
 0x18a   : > { %v965_v62 = vmul.f32 %v2175_v39, %v943_v26  ;;  %v2199_v56 = vpop.permute.xlu0 %1134 }
 0x18c   : > { %v2201_v57 = vadd.f32 %v965_v62, %v921_v63 }
 0x18d   : > { %1322 = vperm.xlu1 %1677, %v1819_v19   ;;  %v951_v2 = vpop.permute.xlu1 %950  ;;  %1058 = vperm.xlu0 %1684, %v2088_v47  }
 0x18e   : > { %v967_v16 = vmul.f32 %v2175_v39, %v951_v2  ;;  %v2207_v27 = vpop.permute.xlu0 %1146 }
 0x190   : > { %v2209_v33 = vadd.f32 %v967_v16, %v923_v0  ;;  %v1686_v0 = vld [vmem:[%s1793_s25 + $0x20] ss:$2 sm:$0xff] }
 0x191   : > { %1332 = vperm.xlu1 %1677, %v1826_v24   ;;  %1462 = vperm.xlu0 %1684, %v1810_v13  }
 0x192   : > { %v2213_v51 = vpop.permute.xlu1 %978  ;;  %v2215_v55 = vpop.permute.xlu0 %1154 }
 0x195   : > { %1342 = vperm.xlu1 %1677, %v1833_v30   ;;  %1474 = vperm.xlu0 %1684, %v1819_v19  }
 0x196   : > { %v987_v61 = vpop.permute.xlu1 %986  ;;  %v2225_v43 = vpop.permute.xlu0 %1162 }
 0x197   : > { %v1015_v21 = vmul.f32 %v2221_v58, %v987_v61  ;;  %v1167_v61 = vsub.s32 5, %v1773_v3 }
 0x199   : > { %v1023_v44 = vadd.f32 %v1015_v21, %v971_v42  ;;  %1681 = vset.pattern.permute.xlu1 %v1695_v1  ;;  %1482 = vperm.xlu0 %1684, %v1826_v24  }
 0x19a   : > { %1362 = vperm.xlu1 %1681, %v1851_v41   ;;  %v991_v15 = vpop.permute.xlu1 %990 }
 0x19b   : > { %v2231_v32 = vpop.permute.xlu0 %1190  ;;  %v1016_v42 = vmul.f32 %v2221_v58, %v991_v15 }
 0x19d   : > { %1490 = vperm.xlu0 %1684, %v1833_v30  }
 0x19e   : > { %1366 = vperm.xlu1 %1681, %v1803_v10   ;;  %v999_v4 = vpop.permute.xlu1 %998 }
 0x19f   : > { %v2235_v45 = vpop.permute.xlu0 %1202 }
 0x1a2   : > { %1374 = vperm.xlu1 %1681, %v1876_v14   ;;  %v1007_v47 = vpop.permute.xlu1 %1006 }
 0x1a3   : > { %v2238_v38 = vpop.permute.xlu0 %1210 }
 0x1a6   : > { %1382 = vperm.xlu1 %1681, %v1891_v28  }
 0x1a7   : > { %v2241_v1 = vpop.permute.xlu1 %1034 }
 0x1a8   : > { %v2243_v54 = vpop.permute.xlu0 %1312 }
 0x1a9   : > { %2575 = vst [vmem:[#allocation2_spill] sm:$0xff] %v2243_v54 }
 0x1aa   : > { %1683 = vset.pattern.permute.xlu1 %v1697_v9 }
 0x1ab   : > { %1410 = vperm.xlu1 %1683, %v1810_v13   ;;  %v1039_v8 = vpop.permute.xlu1 %1038  ;;  %v1115_v13 = vsub.s32 4, %v1773_v3 }
 0x1ac   : > { %v1067_v48 = vmul.f32 %v2247_v46, %v1039_v8  ;;  %v2252_v49 = vpop.permute.xlu0 %1327 }
 0x1ad   : > { %2576 = vst [vmem:[#allocation3_spill] sm:$0xff] %v2252_v49 }
 0x1ae   : > { %v1075_v12 = vadd.f32 %v1067_v48, %v1023_v44 }
 0x1af   : > { %1418 = vperm.xlu1 %1683, %v1803_v10   ;;  %v2255_v11 = vpop.permute.xlu1 %1046  ;;  %v2271_v10 = vrot.slane %v2169_v17, %v1115_v13  ;;  %v1018_v13 = vmul.f32 %v2221_v58, %v999_v4 }
 0x1b0   : > { %v2257_v22 = vpop.permute.xlu0 %1337 }
 0x1b1   : > { %2577 = vst [vmem:[#allocation4_spill] sm:$0xff] %v2257_v22  ;;  %v1118_v49 = vmul.f32 %v2271_v10, %v2171_v52 }
 0x1b3   : > { %1422 = vperm.xlu1 %1683, %v1819_v19   ;;  %v2260_v29 = vpop.permute.xlu1 %1054 }
 0x1b5   : > { %v2262_v9 = vpop.permute.xlu0 %1238 }
 0x1b7   : > { %1430 = vperm.xlu1 %1683, %v1826_v24  }
 0x1b8   : > { %v2266_v59 = vpop.permute.xlu1 %1082 }
 0x1b9   : > { %v2268_v31 = vpop.permute.xlu0 %1250 }
 0x1bb   : > { %1438 = vperm.xlu1 %1683, %v1833_v30  }
 0x1bc   : > { %v1091_v26 = vpop.permute.xlu1 %1090 }
 0x1bd   : > { %v1119_v19 = vmul.f32 %v2271_v10, %v1091_v26  ;;  %v2275_v63 = vpop.permute.xlu0 %1258 }
 0x1bf   : > { %v1127_v62 = vadd.f32 %v1119_v19, %v1075_v12  ;;  %1685 = vset.pattern.permute.xlu1 %v1698_v50  ;;  %v920_v50 = vmul.f32 %v2179_v18, %v2154_v60  ;;  %v2303_v60 = vrot.slane %v2169_v17, %v1167_v61 }
 0x1c0   : > { %1466 = vperm.xlu1 %1685, %v1851_v41   ;;  %v2279_v24 = vpop.permute.xlu1 %1094 }
 0x1c1   : > { %v2281_v2 = vpop.permute.xlu0 %1266 }
 0x1c4   : > { %1470 = vperm.xlu1 %1685, %v1686_v0   ;;  %v2284_v16 = vpop.permute.xlu1 %1102  ;;  %v924_v0 = vmul.f32 %v2179_v18, %v2162_v36 }
 0x1c6   : > { %v2286_v34 = vpop.permute.xlu0 %926 }
 0x1c8   : > { %1478 = vperm.xlu1 %1685, %v1876_v14   ;;  %v2289_v30 = vpop.permute.xlu1 %1110  ;;  %v922_v14 = vmul.f32 %v2179_v18, %v2158_v53 }
 0x1ca   : > { %v939_v37 = vpop.permute.xlu0 %938 }
 0x1cb   : > { %v964_v41 = vmul.f32 %v2175_v39, %v939_v37 }
 0x1cc   : > { %1486 = vperm.xlu1 %1685, %v1891_v28  }
 0x1cd   : > { %v972_v21 = vadd.f32 %v964_v41, %v920_v50  ;;  %v1139_v44 = vpop.permute.xlu1 %1138  ;;  %v1020_v41 = vmul.f32 %v2221_v58, %v1007_v47 }
 0x1ce   : > { %v947_v8 = vpop.permute.xlu0 %946 }
 0x1cf   : > { %v966_v48 = vmul.f32 %v2175_v39, %v947_v8  ;;  %v2300_v12 = vadd.f32 %v1016_v42, %v972_v21 }
 0x1d1   : > { %v974_v26 = vadd.f32 %v966_v48, %v922_v14  ;;  %v1143_v19 = vpop.permute.xlu1 %1142  ;;  %v1219_v48 = vsub.s32 6, %v1773_v3 }
 0x1d2   : > { %v1171_v28 = vmul.f32 %v2303_v60, %v1143_v19  ;;  %v955_v15 = vpop.permute.xlu0 %954 }
 0x1d3   : > { %v968_v37 = vmul.f32 %v2175_v39, %v955_v15  ;;  %v2310_v53 = vadd.f32 %v1018_v13, %v974_v26  ;;  %v2325_v13 = vrot.slane %v2169_v17, %v1219_v48 }
 0x1d4   : > { %v1179_v50 = vadd.f32 %v1171_v28, %v1127_v62 }
 0x1d5   : > { %v976_v42 = vadd.f32 %v968_v37, %v924_v0  ;;  %v1151_v61 = vpop.permute.xlu1 %1150  ;;  %v1222_v52 = vmul.f32 %v2325_v13, %v2231_v32 }
 0x1d6   : > { %v2313_v21 = vpop.permute.xlu0 %1358 }
 0x1d7   : > { %v2315_v4 = vadd.f32 %v1020_v41, %v976_v42  ;;  %v1066_v41 = vmul.f32 %v2247_v46, %v2241_v1 }
 0x1d9   : > { %v1159_v8 = vpop.permute.xlu1 %1158 }
 0x1da   : > { %v2317_v14 = vpop.permute.xlu0 %1370 }
 0x1de   : > { %v2320_v19 = vpop.permute.xlu1 %1186  ;;  %v2322_v36 = vpop.permute.xlu0 %1378 }
 0x1df   : > { %2578 = vst [vmem:[#allocation5_spill] sm:$0xff] %v2322_v36 }
 0x1e2   : > { %v1195_v62 = vpop.permute.xlu1 %1194  ;;  %v2327_v47 = vpop.permute.xlu0 %1386 }
 0x1e3   : > { %2579 = vst [vmem:[#allocation6_spill] sm:$0xff] %v2327_v47  ;;  %v1223_v26 = vmul.f32 %v2325_v13, %v1195_v62 }
 0x1e5   : > { %v1231_v28 = vadd.f32 %v1223_v26, %v1179_v50  ;;  %v1271_v50 = vsub.s32 7, %v1773_v3  ;;  %v1069_v26 = vmul.f32 %v2247_v46, %v2255_v11  ;;  %v1071_v11 = vmul.f32 %v2247_v46, %v2260_v29 }
 0x1e6   : > { %v2330_v15 = vpop.permute.xlu1 %1198 }
 0x1e7   : > { %v983_v0 = vpop.permute.xlu0 %982 }
 0x1e8   : > { %v1014_v37 = vmul.f32 %v2221_v58, %v983_v0  ;;  %v1170_v0 = vmul.f32 %v2303_v60, %v1139_v44 }
 0x1ea   : > { %v1022_v42 = vadd.f32 %v1014_v37, %v2188_v35  ;;  %v2336_v22 = vpop.permute.xlu1 %1206  ;;  %v1121_v37 = vmul.f32 %v2271_v10, %v2184_v23 }
 0x1eb   : > { %v995_v48 = vpop.permute.xlu0 %994 }
 0x1ec   : > { %v1074_v54 = vadd.f32 %v1066_v41, %v1022_v42  ;;  %v1017_v62 = vmul.f32 %v2221_v58, %v995_v48  ;;  %v1123_v48 = vmul.f32 %v2271_v10, %v2193_v25  ;;  %v1227_v25 = vmul.f32 %v2325_v13, %v2238_v38 }
 0x1ed   : > { %v1013_v38 = vmul.f32 %v2221_v58, %v2213_v51 }
 0x1ee   : > { %v1126_v47 = vadd.f32 %v1118_v49, %v1074_v54  ;;  %v1025_v1 = vadd.f32 %v1017_v62, %v2201_v57  ;;  %v2346_v35 = vpop.permute.xlu1 %1214  ;;  %v2356_v54 = vrot.slane %v2169_v17, %v1271_v50  ;;  %v1173_v57 = vmul.f32 %v2303_v60, %v1151_v61 }
 0x1ef   : > { %v1003_v36 = vpop.permute.xlu0 %1002  ;;  %v1175_v50 = vmul.f32 %v2303_v60, %v1159_v8  ;;  %v917_v8 = vmul.f32 %v2179_v18, %v2149_v40  ;;  %v1117_v40 = vmul.f32 %v2271_v10, %v2266_v59  ;;  %v1172_v59 = vmul.f32 %v2303_v60, %v2207_v27 }
 0x1f0   : > { %v1077_v41 = vadd.f32 %v1069_v26, %v1025_v1  ;;  %v1019_v3 = vmul.f32 %v2221_v58, %v1003_v36  ;;  %v1178_v42 = vadd.f32 %v1170_v0, %v1126_v47  ;;  %v1225_v36 = vmul.f32 %v2325_v13, %v2235_v45 }
 0x1f1   : > { %v961_v45 = vmul.f32 %v2175_v39, %v2286_v34  ;;  %v1120_v58 = vmul.f32 %v2271_v10, %v2279_v24  ;;  %v1122_v24 = vmul.f32 %v2271_v10, %v2284_v16  ;;  %v1124_v16 = vmul.f32 %v2271_v10, %v2289_v30 }
 0x1f2   : > { %v1129_v49 = vadd.f32 %v1121_v37, %v1077_v41  ;;  %v1027_v44 = vadd.f32 %v1019_v3, %v2209_v33  ;;  %v1230_v23 = vadd.f32 %v1222_v52, %v1178_v42  ;;  %v1228_v10 = vmul.f32 %v2325_v13, %v2346_v35 }
 0x1f3   : > { %v1243_v32 = vpop.permute.xlu1 %1242  ;;  %v2362_v62 = vpop.permute.xlu0 %1414 }
 0x1f4   : > { %v1079_v47 = vadd.f32 %v1071_v11, %v1027_v44  ;;  %v1274_v29 = vmul.f32 %v2356_v54, %v1243_v32  ;;  %v1181_v17 = vadd.f32 %v1173_v57, %v1129_v49  ;;  %v969_v49 = vadd.f32 %v961_v45, %v917_v8 }
 0x1f5   : > { %v1174_v8 = vmul.f32 %v2303_v60, %v2215_v55 }
 0x1f6   : > { %v1131_v61 = vadd.f32 %v1123_v48, %v1079_v47  ;;  %v2368_v26 = vadd.f32 %v1274_v29, %v1230_v23  ;;  %v1233_v33 = vadd.f32 %v1225_v36, %v1181_v17  ;;  %v1169_v29 = vmul.f32 %v2303_v60, %v2199_v56 }
 0x1f7   : > { %v1247_v0 = vpop.permute.xlu1 %1246  ;;  %v2370_v1 = vpop.permute.xlu0 %1426  ;;  %v1273_v56 = vmul.f32 %v2356_v54, %v2262_v9  ;;  %v1276_v9 = vmul.f32 %v2356_v54, %v2268_v31  ;;  %v1278_v31 = vmul.f32 %v2356_v54, %v2275_v63  ;;  %v1304_v63 = vld [vmem:[%s2572_s9] sm:$0xf] }
 0x1f8   : > { %v1275_v37 = vmul.f32 %v2356_v54, %v1247_v0  ;;  %v1183_v52 = vadd.f32 %v1175_v50, %v1131_v61  ;;  %v1221_v50 = vmul.f32 %v2325_v13, %v2320_v19  ;;  %v1224_v19 = vmul.f32 %v2325_v13, %v2330_v15 }
 0x1f9   : > { %v1226_v15 = vmul.f32 %v2325_v13, %v2336_v22  ;;  %v2446_v13 = vrot.slane %v1304_v63, %v1787_v7  ;;  %v2449_v35 = vrot.slane %v1304_v63, %v1781_v5 }
 0x1fa   : > { %v2377_v41 = vadd.f32 %v1275_v37, %v1231_v28  ;;  %v1235_v3 = vadd.f32 %v1227_v25, %v1183_v52  ;;  %v1021_v28 = vadd.f32 %v1013_v38, %v969_v49 }
 0x1fb   : > { %v1255_v42 = vpop.permute.xlu1 %1254  ;;  %v2381_v11 = vpop.permute.xlu0 %1434 }
 0x1fc   : > { %v1277_v57 = vmul.f32 %v2356_v54, %v1255_v42 }
 0x1fe   : > { %v2384_v44 = vadd.f32 %v1277_v57, %v1233_v33 }
 0x1ff   : > { %v1263_v23 = vpop.permute.xlu1 %1262 }
 0x200   : > { %v1279_v39 = vmul.f32 %v2356_v54, %v1263_v23  ;;  %v1031_v34 = vpop.permute.xlu0 %1030 }
 0x201   : > { %v1065_v48 = vmul.f32 %v2247_v46, %v1031_v34 }
 0x202   : > { %v2390_v32 = vadd.f32 %v1279_v39, %v1235_v3 }
 0x203   : > { %v1073_v18 = vadd.f32 %v1065_v48, %v1021_v28  ;;  %v1176_v28 = vmul.f32 %v2303_v60, %v2225_v43 }
 0x204   : > { %v1308_v36 = vpop.permute.xlu1 %1307  ;;  %v1043_v47 = vpop.permute.xlu0 %1042 }
 0x205   : > { %v1125_v17 = vadd.f32 %v1117_v40, %v1073_v18  ;;  %v1068_v51 = vmul.f32 %v2247_v46, %v1043_v47  ;;  %v1280_v18 = vmul.f32 %v2356_v54, %v2281_v2  ;;  %v1349_v2 = vmul.f32 %v2446_v13, %v1308_v36 }
 0x206   : > { %v2455_v54 = vrot.slane %v1304_v63, %v1937_v20  ;;  %v2467_v20 = vld [vmem:[%s2573_s10] ss:$0 sm:$0xff] }
 0x207   : > { %v1177_v61 = vadd.f32 %v1169_v29, %v1125_v17  ;;  %v1076_v33 = vadd.f32 %v1068_v51, %v2300_v12 }
 0x208   : > { %v2404_v0 = vpop.permute.xlu1 %1317  ;;  %v1051_v25 = vpop.permute.xlu0 %1050 }
 0x209   : > { %v1229_v37 = vadd.f32 %v1221_v50, %v1177_v61  ;;  %v1128_v52 = vadd.f32 %v1120_v58, %v1076_v33  ;;  %v1070_v45 = vmul.f32 %v2247_v46, %v1051_v25  ;;  %v1393_v58 = vmul.f32 %v2449_v35, %v2313_v21 }
 0x20a   : > { %v2460_v50 = vrot.slane %v1304_v63, %v1784_v6  ;;  %v2473_v6 = vld [vmem:[%s2571_s8] ss:$0 sm:$0xff] }
 0x20b   : > { %v1281_v12 = vadd.f32 %v1273_v56, %v1229_v37  ;;  %v1180_v3 = vadd.f32 %v1172_v59, %v1128_v52  ;;  %v1078_v27 = vadd.f32 %v1070_v45, %v2310_v53  ;;  %v1401_v61 = vadd.f32 %v1393_v58, %v1349_v2 }
 0x20c   : > { %v1323_v42 = vpop.permute.xlu1 %1322  ;;  %v1059_v57 = vpop.permute.xlu0 %1058  ;;  %v1396_v37 = vmul.f32 %v2449_v35, %v2317_v14 }
 0x20d   : > { %v1232_v49 = vadd.f32 %v1224_v19, %v1180_v3  ;;  %v1130_v38 = vadd.f32 %v1122_v24, %v1078_v27  ;;  %v1072_v23 = vmul.f32 %v2247_v46, %v1059_v57  ;;  %v1352_v56 = vmul.f32 %v2446_v13, %v1323_v42  ;;  %v2580_v42 = vld [vmem:[#allocation5_spill] sm:$0xff] }
 0x20e   : > { %v1296_v52 = vadd.f32 %v2473_v6, %v1281_v12  ;;  %v1398_v12 = vmul.f32 %v2449_v35, %v2580_v42 }
 0x20f   : > { %v2423_v39 = vadd.f32 %v1276_v9, %v1232_v49  ;;  %v1182_v53 = vadd.f32 %v1174_v8, %v1130_v38  ;;  %v1080_v55 = vadd.f32 %v1072_v23, %v2315_v4  ;;  %v1404_v19 = vadd.f32 %v1396_v37, %v1352_v56 }
 0x210   : > { %v1333_v34 = vpop.permute.xlu1 %1332  ;;  %v1463_v51 = vpop.permute.xlu0 %1462 }
 0x211   : > { %v1234_v48 = vadd.f32 %v1226_v15, %v1182_v53  ;;  %v1132_v46 = vadd.f32 %v1124_v16, %v1080_v55  ;;  %v1497_v5 = vmul.f32 %v2455_v54, %v1463_v51  ;;  %v1354_v3 = vmul.f32 %v2446_v13, %v1333_v34  ;;  %v2581_v55 = vld [vmem:[#allocation6_spill] sm:$0xff] }
 0x212   : > { %v1400_v34 = vmul.f32 %v2449_v35, %v2581_v55  ;;  %v1298_v55 = vadd.f32 %v2473_v6, %v2377_v41  ;;  %v1300_v41 = vadd.f32 %v2473_v6, %v2384_v44 }
 0x213   : > { %v2432_v30 = vadd.f32 %v1278_v31, %v1234_v48  ;;  %v1184_v22 = vadd.f32 %v1176_v28, %v1132_v46  ;;  %v1406_v23 = vadd.f32 %v1398_v12, %v1354_v3  ;;  %v1299_v48 = vadd.f32 %v2473_v6, %v2423_v39 }
 0x214   : > { %v1343_v40 = vpop.permute.xlu1 %1342  ;;  %v1475_v25 = vpop.permute.xlu0 %1474 }
 0x215   : > { %v1236_v4 = vadd.f32 %v1228_v10, %v1184_v22  ;;  %v1500_v57 = vmul.f32 %v2455_v54, %v1475_v25  ;;  %v1356_v16 = vmul.f32 %v2446_v13, %v1343_v40  ;;  %v2582_v22 = vld [vmem:[#allocation2_spill] sm:$0xff] }
 0x216   : > { %v1350_v40 = vmul.f32 %v2446_v13, %v2582_v22 }
 0x217   : > { %v2436_v47 = vadd.f32 %v1280_v18, %v1236_v4  ;;  %v1408_v63 = vadd.f32 %v1400_v34, %v1356_v16  ;;  %v2584_v16 = vld [vmem:[#allocation4_spill] sm:$0xff] }
 0x218   : > { %v1483_v14 = vpop.permute.xlu0 %1482 }
 0x219   : > { %v1363_v29 = vpop.permute.xlu1 %1362  ;;  %v1502_v31 = vmul.f32 %v2455_v54, %v1483_v14 }
 0x21a   : > { %v1394_v28 = vmul.f32 %v2449_v35, %v1363_v29 }
 0x21c   : > { %v1491_v18 = vpop.permute.xlu0 %1490  ;;  %v1402_v29 = vadd.f32 %v1394_v28, %v1350_v40 }
 0x21d   : > { %v2438_v43 = vpop.permute.xlu1 %1366  ;;  %v1504_v39 = vmul.f32 %v2455_v54, %v1491_v18 }
 0x21e   : > { %v1395_v25 = vmul.f32 %v2449_v35, %v2438_v43 }
 0x221   : > { %v2440_v60 = vpop.permute.xlu1 %1374 }
 0x222   : > { %v1397_v56 = vmul.f32 %v2449_v35, %v2440_v60  ;;  %v1303_v60 = vadd.f32 %v2473_v6, %v2436_v47 }
 0x225   : > { %v2451_v17 = vpop.permute.xlu1 %1382 }
 0x22a   : > { %v1411_v7 = vpop.permute.xlu1 %1410 }
 0x22b   : > { %v1445_v33 = vmul.f32 %v2460_v50, %v1411_v7  ;;  %v1301_v7 = vadd.f32 %v2473_v6, %v2432_v30 }
 0x22d   : > { %v1453_v59 = vadd.f32 %v1445_v33, %v1401_v61 }
 0x22e   : > { %v1419_v36 = vpop.permute.xlu1 %1418 }
 0x22f   : > { %v1505_v21 = vadd.f32 %v1497_v5, %v1453_v59  ;;  %v1446_v59 = vmul.f32 %v2460_v50, %v2362_v62 }
 0x231   : > { %v1520_v45 = vadd.f32 %v2467_v20, %v1505_v21 }
 0x232   : > { %v1423_v24 = vpop.permute.xlu1 %1422 }
 0x233   : > { %v1528_v27 = vadd.f32 %v1520_v45, %v1296_v52  ;;  %v1448_v8 = vmul.f32 %v2460_v50, %v1423_v24  ;;  %v1351_v52 = vmul.f32 %v2446_v13, %v2404_v0  ;;  %v1447_v45 = vmul.f32 %v2460_v50, %v1419_v36 }
 0x234   : > { %v1454_v24 = vadd.f32 %v1446_v59, %v1402_v29  ;;  %v1297_v0 = vadd.f32 %v2473_v6, %v2368_v26  ;;  %v1355_v26 = vmul.f32 %v2446_v13, %v2584_v16 }
 0x235   : > { %v1536_v9 = vmax.f32 %v1528_v27, 0.0  ;;  %v1456_v49 = vadd.f32 %v1448_v8, %v1404_v19  ;;  %v2583_v19 = vld [vmem:[#allocation3_spill] sm:$0xff]  ;;  %v1403_v8 = vadd.f32 %v1395_v25, %v1351_v52 }
 0x236   : > { %v1431_v38 = vpop.permute.xlu1 %1430  ;;  %v1353_v43 = vmul.f32 %v2446_v13, %v2583_v19 }
 0x237   : > { %1545 = vst.msk [vmem:[%s2485_s30] sm:$0xff] %vm1544_vm2, %v1536_v9  ;;  %v1508_v15 = vadd.f32 %v1500_v57, %v1456_v49  ;;  %v1450_v53 = vmul.f32 %v2460_v50, %v1431_v38  ;;  %v1399_v57 = vmul.f32 %v2449_v35, %v2451_v17  ;;  %v1455_v9 = vadd.f32 %v1447_v45, %v1403_v8 }
 0x238   : > { %v1405_v42 = vadd.f32 %v1397_v56, %v1353_v43  ;;  %v1449_v38 = vmul.f32 %v2460_v50, %v2370_v1 }
 0x239   : > { %v1523_v46 = vadd.f32 %v2467_v20, %v1508_v15  ;;  %v1458_v10 = vadd.f32 %v1450_v53, %v1406_v23  ;;  %v1407_v34 = vadd.f32 %v1399_v57, %v1355_v26 }
 0x23a   : > { %v1439_v4 = vpop.permute.xlu1 %1438  ;;  %v1457_v17 = vadd.f32 %v1449_v38, %v1405_v42 }
 0x23b   : > { %v1531_v2 = vadd.f32 %v1523_v46, %v1299_v48  ;;  %v1510_v51 = vadd.f32 %v1502_v31, %v1458_v10  ;;  %v1452_v58 = vmul.f32 %v2460_v50, %v1439_v4  ;;  %v1451_v48 = vmul.f32 %v2460_v50, %v2381_v11 }
 0x23c   : > { %v1302_v50 = vadd.f32 %v2473_v6, %v2390_v32 }
 0x23d   : > { %v1539_v61 = vmax.f32 %v1531_v2, 0.0  ;;  %v1525_v5 = vadd.f32 %v2467_v20, %v1510_v51  ;;  %v1460_v33 = vadd.f32 %v1452_v58, %v1408_v63  ;;  %v1459_v18 = vadd.f32 %v1451_v48, %v1407_v34 }
 0x23f   : > { %1548 = vst.msk [vmem:[%s2485_s30 + $0x18] sm:$0xff] %vm1544_vm2, %v1539_v61  ;;  %v1533_v21 = vadd.f32 %v1525_v5, %v1301_v7  ;;  %v1512_v30 = vadd.f32 %v1504_v39, %v1460_v33  ;;  %v1467_v37 = vpop.permute.xlu1 %1466 }
 0x240   : > { %v1498_v62 = vmul.f32 %v2455_v54, %v1467_v37 }
 0x241   : > { %v1541_v3 = vmax.f32 %v1533_v21, 0.0  ;;  %v1527_v27 = vadd.f32 %v2467_v20, %v1512_v30 }
 0x242   : > { %v1506_v14 = vadd.f32 %v1498_v62, %v1454_v24 }
 0x243   : > { %1550 = vst.msk [vmem:[%s2485_s30 + $0x28] sm:$0xff] %vm1544_vm2, %v1541_v3  ;;  %v1535_v36 = vadd.f32 %v1527_v27, %v1303_v60  ;;  %v1471_v12 = vpop.permute.xlu1 %1470 }
 0x244   : > { %v1521_v49 = vadd.f32 %v2467_v20, %v1506_v14  ;;  %v1499_v47 = vmul.f32 %v2455_v54, %v1471_v12 }
 0x245   : > { %v1543_v23 = vmax.f32 %v1535_v36, 0.0 }
 0x246   : > { %v1529_v15 = vadd.f32 %v1521_v49, %v1297_v0  ;;  %v1507_v53 = vadd.f32 %v1499_v47, %v1455_v9 }
 0x247   : > { %1552 = vst.msk [vmem:[%s2485_s30 + $0x38] sm:$0xff] %vm1544_vm2, %v1543_v23  ;;  %v1479_v35 = vpop.permute.xlu1 %1478 }
 0x248   : > { %v1537_v28 = vmax.f32 %v1529_v15, 0.0  ;;  %v1522_v31 = vadd.f32 %v2467_v20, %v1507_v53  ;;  %v1501_v1 = vmul.f32 %v2455_v54, %v1479_v35 }
 0x24a   : > { %1546 = vst.msk [vmem:[%s2485_s30 + $0x8] sm:$0xff] %vm1544_vm2, %v1537_v28  ;;  %v1530_v13 = vadd.f32 %v1522_v31, %v1298_v55  ;;  %v1509_v46 = vadd.f32 %v1501_v1, %v1457_v17 }
 0x24b   : > { %v1487_v10 = vpop.permute.xlu1 %1486 }
 0x24c   : > { %v1538_v22 = vmax.f32 %v1530_v13, 0.0  ;;  %v1524_v40 = vadd.f32 %v2467_v20, %v1509_v46  ;;  %v1503_v4 = vmul.f32 %v2455_v54, %v1487_v10 }
 0x24e   : > { %1547 = vst.msk [vmem:[%s2485_s30 + $0x10] sm:$0xff] %vm1544_vm2, %v1538_v22  ;;  %v1532_v63 = vadd.f32 %v1524_v40, %v1300_v41  ;;  %v1511_v11 = vadd.f32 %v1503_v4, %v1459_v18 }
 0x250   : > { %v1540_v2 = vmax.f32 %v1532_v63, 0.0  ;;  %v1526_v51 = vadd.f32 %v2467_v20, %v1511_v11 }
 0x252   : > { %1549 = vst.msk [vmem:[%s2485_s30 + $0x20] sm:$0xff] %vm1544_vm2, %v1540_v2  ;;  %v1534_v44 = vadd.f32 %v1526_v51, %v1302_v50 }
 0x254   : > { %v1542_v58 = vmax.f32 %v1534_v44, 0.0 }
 0x256   : > { %1551 = vst.msk [vmem:[%s2485_s30 + $0x30] sm:$0xff] %vm1544_vm2, %v1542_v58 }
 0x257 PF: > { %s21_s17 = sadd.s32 1, %s1693_s17  }
 0x258   : > { %p18_p4 = scmp.ge.s32.totalorder %s21_s17, 6  }
 0x25a   :  { %20 = sbr.rel (!%p18_p4) target bundleno = 1 (0x1), region = 109 }

</bundles_post_ra>
